<compile_context>
chip_gen: v7x
topology: tpu7x:2x2x1
jax: 0.10.0
libtpu: 0.0.40
codegen_flags: <defaults>
</compile_context>

<pallas_src>
import jax
import jax.numpy as jnp
from jax import lax
from jax.experimental import pallas as pl
from jax.experimental.pallas import tpu as pltpu


# ----------------------------------------------------------------------------------
# Kernel
# ----------------------------------------------------------------------------------
def lstm_regressor_kernel(
    x_ref,       # (Tc, Bt, D)  bf16  time-major chunk of the input
    wih0_ref,    # (D,  4H)     bf16  layer-0 input weights, gate order [i,f,o,g],
                 #                    i/f/o columns pre-scaled by 0.5
    whh0_ref,    # (H,  4H)     bf16  layer-0 recurrent weights, same packing
    b0_ref,      # (1,  4H)     f32   b_ih0 + b_hh0, same packing
    wih1_ref,    # (H,  4H)     bf16  layer-1 input weights
    whh1_ref,    # (H,  4H)     bf16  layer-1 recurrent weights
    b1_ref,      # (1,  4H)     f32
    wfc_ref,     # (1,  H)      f32   fc weight (row vector)
    bfc_ref,     # (1,  1)      f32   fc bias
    out_ref,     # (Bt, 1)      f32
    h0_ref, c0_ref, h1_ref, c1_ref,   # (Bt, H) f32 persistent recurrent state (VMEM)
):
    t_blk = pl.program_id(1)
    tc = x_ref.shape[0]
    h = h0_ref.shape[-1]

    # First time-chunk for this batch tile: reset the recurrent state.
    @pl.when(t_blk == 0)
    def _init():
        h0_ref[...] = jnp.zeros_like(h0_ref)
        c0_ref[...] = jnp.zeros_like(c0_ref)
        h1_ref[...] = jnp.zeros_like(h1_ref)
        c1_ref[...] = jnp.zeros_like(c1_ref)

    # Loop-invariant weight loads hoisted out of the time loop (JAX does not CSE
    # these). Biases stay (1, 4H): broadcast per use via the add (cheap sublane
    # broadcast) rather than as a materialized loop-carried (Bt, 4H) f32 value.
    wih0 = wih0_ref[...]
    whh0 = whh0_ref[...]
    wih1 = wih1_ref[...]
    whh1 = whh1_ref[...]
    b0 = b0_ref[...]
    b1 = b1_ref[...]

    def cell(inp, h_prev, c_prev, wih, whh, b):
        # Two bf16 MXU dots into one f32 accumulator — no lane-axis concat, no
        # f32 round-trip of the (already bf16) input.
        gates = (
            jnp.dot(inp.astype(jnp.bfloat16), wih, preferred_element_type=jnp.float32)
            + jnp.dot(h_prev.astype(jnp.bfloat16), whh,
                      preferred_element_type=jnp.float32)
            + b
        )
        # Gate columns packed as [i, f, o, g]; i/f/o weight AND bias columns were
        # pre-scaled by 0.5 at pack time so that sigmoid(z) = 0.5*tanh(z/2) + 0.5
        # reduces to a single EUP tanh over all 4H lanes plus cheap VPU fixup.
        t = jnp.tanh(gates)
        ifo = 0.5 * t[:, : 3 * h] + 0.5
        g = t[:, 3 * h:]
        i_g = ifo[:, :h]
        f_g = ifo[:, h: 2 * h]
        o_g = ifo[:, 2 * h:]
        c_new = f_g * c_prev + i_g * g
        h_new = o_g * jnp.tanh(c_new)
        return h_new, c_new

    def step(k, carry):
        h0, c0, h1, c1 = carry
        x_t = x_ref[k]                                  # (Bt, D) bf16
        h0, c0 = cell(x_t, h0, c0, wih0, whh0, b0)
        # nn.LSTM inter-layer dropout is identity at inference time (eval mode).
        h1, c1 = cell(h0, h1, c1, wih1, whh1, b1)
        return h0, c0, h1, c1

    # Bounded partial unroll: keeps LLO scheduling visibility (layer-1(t) and
    # layer-0(t+1) are data-independent and can overlap their MXU pushes) without
    # the vreg/spill blow-up of fully unrolling a large time chunk.
    carry0 = (h0_ref[...], c0_ref[...], h1_ref[...], c1_ref[...])
    h0, c0, h1, c1 = lax.fori_loop(0, tc, step, carry0, unroll=min(8, tc))
    h0_ref[...] = h0
    c0_ref[...] = c0
    h1_ref[...] = h1
    c1_ref[...] = c1

    # Last chunk: fc(out[:, -1, :]) as a VPU multiply + lane reduction (avoids an
    # N=1 MXU matmul with 1/128-column occupancy).
    @pl.when(t_blk == pl.num_programs(1) - 1)
    def _finalize():
        out_ref[...] = (
            jnp.sum(h1 * wfc_ref[...], axis=-1, keepdims=True) + bfc_ref[...]
        )


# ----------------------------------------------------------------------------------
# Wrapper helpers
# ----------------------------------------------------------------------------------
def _resident_spec(shape):
    """BlockSpec for a weight/bias whose block index never changes.

    Single-buffered (pl.Buffered(1)) when the installed Pallas accepts
    pipeline_mode: double-buffering a constant-index block only doubles its VMEM
    footprint (matters for large H on v7x's 64 MiB VMEM)."""
    index_map = lambda b, t: (0,) * len(shape)
    try:
        return pl.BlockSpec(shape, index_map, pipeline_mode=pl.Buffered(1))
    except (TypeError, AttributeError, ValueError):
        return pl.BlockSpec(shape, index_map)


def _default_time_chunk(T):
    # Amortize the ~0.35 µs/grid-step pipeline overhead with a large chunk; the
    # in-kernel time loop is only partially unrolled so this does not blow vregs.
    return max(c for c in (64, 32, 16, 8, 4, 2, 1) if T % c == 0)


def _default_batch_tile(B):
    # Keep the whole batch on one tile when it is small (best MXU M-utilisation and
    # a single init/finalize), but split large batches in two 16-row-aligned halves
    # so grid[0] >= 2 and the v7x megacore shards the 'parallel' batch axis across
    # both TensorCores (no effect on v5e/v6e: 1 TC/chip).
    if B >= 256 and B % 2 == 0 and (B // 2) % 16 == 0:
        return B // 2
    return B


def _vmem_limit_bytes(tc, bt, D, H):
    """Explicit scoped-VMEM budget from the actual (lane/sublane padded) buffers."""
    lanes = lambda n: -(-n // 128) * 128
    subl = lambda n, g: -(-n // g) * g
    H4 = 4 * H
    # x slab: double-buffered bf16, last dim D padded to 128 lanes (the review's
    # "silent ~8x" item when D << 128).
    x_slab = 2 * tc * subl(bt, 16) * lanes(D) * 2
    # 4 gate-weight matrices (bf16); counted x2 buffers in case single-buffering
    # is unavailable (conservative).
    weights = 2 * (subl(D, 16) + 3 * subl(H, 16)) * lanes(H4) * 2
    biases = 2 * 2 * subl(1, 8) * lanes(H4) * 4
    fc = subl(1, 8) * (lanes(H) + lanes(1)) * 4
    state = 4 * subl(bt, 8) * lanes(H) * 4            # h0, c0, h1, c1 scratch
    outb = 2 * subl(bt, 8) * lanes(1) * 4
    budget = x_slab + weights + biases + fc + state + outb
    # Generous headroom for compiler-internal scratch; stay within every chip's
    # physical VMEM (64 MiB/TC on v7x).
    return int(min(64 << 20, max(32 << 20, 2 * budget)))


def prepare_inputs(x_btd):
    """One-time layout/dtype prep: batch-first f32 -> time-major bf16.

    Call ONCE outside the timed path when invoking the kernel repeatedly; doing
    the transpose+cast per call is a full extra HBM pass over x."""
    return jnp.transpose(x_btd, (1, 0, 2)).astype(jnp.bfloat16)


def lstm_regressor_forward(x, packed, *, time_chunk=None, batch_tile=None,
                           prepared=False):
    """Forward pass of LSTMRegressor (eval-mode semantics).

    x: (B, T, D) float batch-first (PyTorch convention) when prepared=False, or
       the result of prepare_inputs(x) — (T, B, D) bfloat16 — when prepared=True.
    """
    if not prepared:
        x = prepare_inputs(x)
    T, B, D = x.shape
    H = packed["wfc"].shape[-1]
    H4 = 4 * H

    tc = time_chunk if time_chunk is not None else _default_time_chunk(T)
    bt = batch_tile if batch_tile is not None else _default_batch_tile(B)
    assert T % tc == 0, "time_chunk must divide T"
    assert B % bt == 0 and (bt == B or bt % 16 == 0), (
        "batch_tile must divide B and be a multiple of 16 (bf16 row packing) "
        "when < B")

    grid = (B // bt, T // tc)

    return pl.pallas_call(
        lstm_regressor_kernel,
        out_shape=jax.ShapeDtypeStruct((B, 1), jnp.float32),
        grid=grid,
        in_specs=[
            pl.BlockSpec((tc, bt, D), lambda b, t: (t, b, 0)),   # streamed x chunk
            _resident_spec((D, H4)),                             # W_ih layer 0
            _resident_spec((H, H4)),                             # W_hh layer 0
            _resident_spec((1, H4)),                             # bias layer 0
            _resident_spec((H, H4)),                             # W_ih layer 1
            _resident_spec((H, H4)),                             # W_hh layer 1
            _resident_spec((1, H4)),                             # bias layer 1
            _resident_spec((1, H)),                              # fc weight
            _resident_spec((1, 1)),                              # fc bias
        ],
        out_specs=pl.BlockSpec((bt, 1), lambda b, t: (b, 0)),
        scratch_shapes=[pltpu.VMEM((bt, H), jnp.float32)] * 4,   # h0, c0, h1, c1
        compiler_params=pltpu.CompilerParams(
            dimension_semantics=("parallel", "arbitrary"),       # batch || , time seq
            vmem_limit_bytes=_vmem_limit_bytes(tc, bt, D, H),
        ),
    )(
        x,
        packed["wih0"], packed["whh0"], packed["b0"],
        packed["wih1"], packed["whh1"], packed["b1"],
        packed["wfc"], packed["bfc"],
    )


# ----------------------------------------------------------------------------------
# Parameter construction / packing
# ----------------------------------------------------------------------------------
def init_params_raw(key, input_dim, hidden_size):
    """Deterministic init with PyTorch nn.LSTM / nn.Linear shapes and gate order."""
    k = 1.0 / (hidden_size ** 0.5)
    keys = jax.random.split(key, 10)

    def u(kk, shape):
        return jax.random.uniform(kk, shape, jnp.float32, -k, k)

    H4 = 4 * hidden_size
    return {
        "wih0": u(keys[0], (H4, input_dim)),
        "whh0": u(keys[1], (H4, hidden_size)),
        "bih0": u(keys[2], (H4,)),
        "bhh0": u(keys[3], (H4,)),
        "wih1": u(keys[4], (H4, hidden_size)),
        "whh1": u(keys[5], (H4, hidden_size)),
        "bih1": u(keys[6], (H4,)),
        "bhh1": u(keys[7], (H4,)),
        "wfc": u(keys[8], (1, hidden_size)),
        "bfc": u(keys[9], (1,)),
    }


def _reorder_scale_gates(a):
    """PyTorch gate order [i, f, g, o] on the leading 4H axis -> [i, f, o, g], with
    the i/f/o blocks pre-scaled by 0.5 (exact in bf16: exponent shift) so that
    sigmoid(z) = 0.5*tanh(z/2) + 0.5 needs only a tanh in the kernel."""
    i, f, g, o = jnp.split(a, 4, axis=0)
    return jnp.concatenate([0.5 * i, 0.5 * f, 0.5 * o, g], axis=0)


def pack_params(raw):
    """PyTorch-layout params -> split (W_ih, W_hh), gate-reordered, half-scaled,
    bf16 MXU-friendly pack."""
    H = raw["whh0"].shape[1]

    def w(a):   # (4H, in) -> (in, 4H) bf16
        return _reorder_scale_gates(a).T.astype(jnp.bfloat16)

    def b(bi, bh):
        return _reorder_scale_gates(bi + bh).reshape(1, 4 * H).astype(jnp.float32)

    return {
        "wih0": w(raw["wih0"]), "whh0": w(raw["whh0"]),
        "b0": b(raw["bih0"], raw["bhh0"]),
        "wih1": w(raw["wih1"]), "whh1": w(raw["whh1"]),
        "b1": b(raw["bih1"], raw["bhh1"]),
        "wfc": raw["wfc"].astype(jnp.float32),
        "bfc": raw["bfc"].reshape(1, 1).astype(jnp.float32),
    }


# ----------------------------------------------------------------------------------
# Pure-JAX references
# ----------------------------------------------------------------------------------
def reference_forward_packed(x_btd, packed):
    """Mirrors the kernel math exactly: packed bf16 weights, split dots, [i,f,o,g]
    gate order, tanh-only activations, f32 state/accumulation, VPU-style fc."""
    B, T, D = x_btd.shape
    H = packed["wfc"].shape[-1]
    x = x_btd.astype(jnp.bfloat16)

    def cell(inp, hst, cst, wih, whh, b):
        gates = (
            jnp.dot(inp.astype(jnp.bfloat16), wih, preferred_element_type=jnp.float32)
            + jnp.dot(hst.astype(jnp.bfloat16), whh,
                      preferred_element_type=jnp.float32)
            + b
        )
        t = jnp.tanh(gates)
        ifo = 0.5 * t[:, :3 * H] + 0.5
        g = t[:, 3 * H:]
        cst = ifo[:, H:2 * H] * cst + ifo[:, :H] * g
        hst = ifo[:, 2 * H:] * jnp.tanh(cst)
        return hst, cst

    z0 = jnp.zeros((B, H), jnp.float32)
    h0, c0, h1, c1 = z0, z0, z0, z0
    for t in range(T):
        h0, c0 = cell(x[:, t, :], h0, c0, packed["wih0"], packed["whh0"], packed["b0"])
        h1, c1 = cell(h0, h1, c1, packed["wih1"], packed["whh1"], packed["b1"])
    return jnp.sum(h1 * packed["wfc"], axis=-1, keepdims=True) + packed["bfc"]


def reference_forward_f32(x_btd, raw):
    """Full-f32 reference with PyTorch-native params and [i, f, g, o] gate order."""
    B, T, D = x_btd.shape
    H = raw["whh0"].shape[1]
    b0 = raw["bih0"] + raw["bhh0"]
    b1 = raw["bih1"] + raw["bhh1"]

    def cell(x_t, hst, cst, wih, whh, b):
        g = x_t @ wih.T + hst @ whh.T + b
        i = jax.nn.sigmoid(g[:, :H])
        f = jax.nn.sigmoid(g[:, H:2 * H])
        gg = jnp.tanh(g[:, 2 * H:3 * H])
        o = jax.nn.sigmoid(g[:, 3 * H:])
        cst = f * cst + i * gg
        hst = o * jnp.tanh(cst)
        return hst, cst

    z0 = jnp.zeros((B, H), jnp.float32)
    h0, c0, h1, c1 = z0, z0, z0, z0
    for t in range(T):
        x_t = x_btd[:, t, :]
        h0, c0 = cell(x_t, h0, c0, raw["wih0"], raw["whh0"], b0)
        h1, c1 = cell(h0, h1, c1, raw["wih1"], raw["whh1"], b1)
    return h1 @ raw["wfc"].T + raw["bfc"]


# ----------------------------------------------------------------------------------
if __name__ == "__main__":
    B, T, D, H = 2, 8, 16, 32   # batch, seq, input_dim, hidden_size (4H = 128 lanes)

    key = jax.random.PRNGKey(0)
    kx, kp = jax.random.split(key)
    x = jax.random.normal(kx, (B, T, D), jnp.float32)

    raw = init_params_raw(kp, input_dim=D, hidden_size=H)
    packed = pack_params(raw)

    # One-time layout/dtype prep outside the timed path (no per-call HBM pass).
    xp = prepare_inputs(x)

    # time_chunk=4 -> grid (1, 2): exercises init / persistent-state / finalize paths.
    out = lstm_regressor_forward(xp, packed, time_chunk=4, prepared=True)
    out = jax.block_until_ready(out)
    assert out.shape == (B, 1)

    # 1) Strict check vs a pure-JAX model of the *same* packed / bf16 / tanh math.
    ref_packed = reference_forward_packed(x, packed)
    assert jnp.allclose(out, ref_packed, atol=5e-4, rtol=5e-4), (out, ref_packed)

    # 2) Semantic check vs full-f32 PyTorch-layout math (bf16 matmul noise only).
    #    Note: h is re-cast to bf16 each step for the recurrent matmul — an explicit
    #    precision decision relative to PyTorch's f32 h@W_hh.
    ref_f32 = reference_forward_f32(x, raw)
    assert jnp.allclose(out, ref_f32, atol=5e-2, rtol=0.0), (out, ref_f32)

    print("KERNEL_OK")
</pallas_src>

<mosaic_0001>
module attributes {stable_mosaic.version = 11 : i64} {
  func.func @lstm_regressor_kernel(%arg0: i32, %arg1: i32, %arg2: memref<4x2x16xbf16, #tpu.memory_space<vmem>>, %arg3: memref<16x128xbf16, #tpu.memory_space<vmem>>, %arg4: memref<32x128xbf16, #tpu.memory_space<vmem>>, %arg5: memref<1x128xf32, #tpu.memory_space<vmem>>, %arg6: memref<32x128xbf16, #tpu.memory_space<vmem>>, %arg7: memref<32x128xbf16, #tpu.memory_space<vmem>>, %arg8: memref<1x128xf32, #tpu.memory_space<vmem>>, %arg9: memref<1x32xf32, #tpu.memory_space<vmem>>, %arg10: memref<1x1xf32, #tpu.memory_space<vmem>>, %arg11: memref<2x1xf32, #tpu.memory_space<vmem>>, %arg12: memref<2x32xf32, #tpu.memory_space<vmem>>, %arg13: memref<2x32xf32, #tpu.memory_space<vmem>>, %arg14: memref<2x32xf32, #tpu.memory_space<vmem>>, %arg15: memref<2x32xf32, #tpu.memory_space<vmem>>) attributes {dimension_semantics = [#tpu.dimension_semantics<parallel>, #tpu.dimension_semantics<arbitrary>], iteration_bounds = array<i64: 1, 2>, scalar_prefetch = 0 : i64, scratch_operands = 4 : i64, tpu.core_type = #tpu.core_type<tc>, window_params = [{transform_indices = @transform_0, window_bounds = array<i64: 4, 2, 16>}, {pipeline_mode = #tpu.pipeline_mode<synchronous>, transform_indices = @transform_1, window_bounds = array<i64: 16, 128>}, {pipeline_mode = #tpu.pipeline_mode<synchronous>, transform_indices = @transform_2, window_bounds = array<i64: 32, 128>}, {pipeline_mode = #tpu.pipeline_mode<synchronous>, transform_indices = @transform_3, window_bounds = array<i64: 1, 128>}, {pipeline_mode = #tpu.pipeline_mode<synchronous>, transform_indices = @transform_4, window_bounds = array<i64: 32, 128>}, {pipeline_mode = #tpu.pipeline_mode<synchronous>, transform_indices = @transform_5, window_bounds = array<i64: 32, 128>}, {pipeline_mode = #tpu.pipeline_mode<synchronous>, transform_indices = @transform_6, window_bounds = array<i64: 1, 128>}, {pipeline_mode = #tpu.pipeline_mode<synchronous>, transform_indices = @transform_7, window_bounds = array<i64: 1, 32>}, {pipeline_mode = #tpu.pipeline_mode<synchronous>, transform_indices = @transform_8, window_bounds = array<i64: 1, 1>}, {transform_indices = @transform_9, window_bounds = array<i64: 2, 1>}]} {
    %c0_i32 = arith.constant 0 : i32
    %0 = arith.cmpi eq, %arg1, %c0_i32 : i32
    %1 = arith.extui %0 : i1 to i32
    %c0_i32_0 = arith.constant 0 : i32
    %2 = arith.cmpi ne, %1, %c0_i32_0 : i32
    scf.if %2 {
      %cst_70 = arith.constant 0.000000e+00 : f32
      %204 = vector.broadcast %cst_70 : f32 to vector<2x32xf32>
      %c0_71 = arith.constant 0 : index
      %c0_72 = arith.constant 0 : index
      %205 = vector.load %arg12[%c0_71, %c0_72] : memref<2x32xf32, #tpu.memory_space<vmem>>, vector<2x32xf32>
      tpu.vector_store %arg12[%c0_71, %c0_72], %204 {strides = array<i32>} : memref<2x32xf32, #tpu.memory_space<vmem>>, vector<2x32xf32>,
      %cst_73 = arith.constant 0.000000e+00 : f32
      %206 = vector.broadcast %cst_73 : f32 to vector<2x32xf32>
      %c0_74 = arith.constant 0 : index
      %c0_75 = arith.constant 0 : index
      %207 = vector.load %arg13[%c0_74, %c0_75] : memref<2x32xf32, #tpu.memory_space<vmem>>, vector<2x32xf32>
      tpu.vector_store %arg13[%c0_74, %c0_75], %206 {strides = array<i32>} : memref<2x32xf32, #tpu.memory_space<vmem>>, vector<2x32xf32>,
      %cst_76 = arith.constant 0.000000e+00 : f32
      %208 = vector.broadcast %cst_76 : f32 to vector<2x32xf32>
      %c0_77 = arith.constant 0 : index
      %c0_78 = arith.constant 0 : index
      %209 = vector.load %arg14[%c0_77, %c0_78] : memref<2x32xf32, #tpu.memory_space<vmem>>, vector<2x32xf32>
      tpu.vector_store %arg14[%c0_77, %c0_78], %208 {strides = array<i32>} : memref<2x32xf32, #tpu.memory_space<vmem>>, vector<2x32xf32>,
      %cst_79 = arith.constant 0.000000e+00 : f32
      %210 = vector.broadcast %cst_79 : f32 to vector<2x32xf32>
      %c0_80 = arith.constant 0 : index
      %c0_81 = arith.constant 0 : index
      %211 = vector.load %arg15[%c0_80, %c0_81] : memref<2x32xf32, #tpu.memory_space<vmem>>, vector<2x32xf32>
      tpu.vector_store %arg15[%c0_80, %c0_81], %210 {strides = array<i32>} : memref<2x32xf32, #tpu.memory_space<vmem>>, vector<2x32xf32>,
    } else {
    }
    %c0 = arith.constant 0 : index
    %c0_1 = arith.constant 0 : index
    %3 = vector.load %arg3[%c0, %c0_1] : memref<16x128xbf16, #tpu.memory_space<vmem>>, vector<16x128xbf16>
    %c0_2 = arith.constant 0 : index
    %c0_3 = arith.constant 0 : index
    %4 = vector.load %arg4[%c0_2, %c0_3] : memref<32x128xbf16, #tpu.memory_space<vmem>>, vector<32x128xbf16>
    %c0_4 = arith.constant 0 : index
    %c0_5 = arith.constant 0 : index
    %5 = vector.load %arg6[%c0_4, %c0_5] : memref<32x128xbf16, #tpu.memory_space<vmem>>, vector<32x128xbf16>
    %c0_6 = arith.constant 0 : index
    %c0_7 = arith.constant 0 : index
    %6 = vector.load %arg7[%c0_6, %c0_7] : memref<32x128xbf16, #tpu.memory_space<vmem>>, vector<32x128xbf16>
    %c0_8 = arith.constant 0 : index
    %c0_9 = arith.constant 0 : index
    %7 = vector.load %arg5[%c0_8, %c0_9] : memref<1x128xf32, #tpu.memory_space<vmem>>, vector<1x128xf32>
    %c0_10 = arith.constant 0 : index
    %c0_11 = arith.constant 0 : index
    %8 = vector.load %arg8[%c0_10, %c0_11] : memref<1x128xf32, #tpu.memory_space<vmem>>, vector<1x128xf32>
    %c0_12 = arith.constant 0 : index
    %c0_13 = arith.constant 0 : index
    %9 = vector.load %arg12[%c0_12, %c0_13] : memref<2x32xf32, #tpu.memory_space<vmem>>, vector<2x32xf32>
    %c0_14 = arith.constant 0 : index
    %c0_15 = arith.constant 0 : index
    %10 = vector.load %arg13[%c0_14, %c0_15] : memref<2x32xf32, #tpu.memory_space<vmem>>, vector<2x32xf32>
    %c0_16 = arith.constant 0 : index
    %c0_17 = arith.constant 0 : index
    %11 = vector.load %arg14[%c0_16, %c0_17] : memref<2x32xf32, #tpu.memory_space<vmem>>, vector<2x32xf32>
    %c0_18 = arith.constant 0 : index
    %c0_19 = arith.constant 0 : index
    %12 = vector.load %arg15[%c0_18, %c0_19] : memref<2x32xf32, #tpu.memory_space<vmem>>, vector<2x32xf32>
    %c0_i32_20 = arith.constant 0 : i32
    %13 = arith.index_cast %c0_i32_20 : i32 to index
    %c0_21 = arith.constant 0 : index
    %c0_22 = arith.constant 0 : index
    %14 = vector.load %arg2[%13, %c0_21, %c0_22] : memref<4x2x16xbf16, #tpu.memory_space<vmem>>, vector<1x2x16xbf16>
    %15 = vector.shape_cast %14 : vector<1x2x16xbf16> to vector<2x16xbf16>
    %cst = arith.constant dense<0.000000e+00> : vector<2x128xf32>
    %16 = tpu.matmul %15, %3, %cst {dimension_numbers = #tpu.dot_dimension_numbers<[1], [0], [0], [1], [0, 0, 1, 1], [], []>} : vector<2x16xbf16>, vector<16x128xbf16>, vector<2x128xf32> -> vector<2x128xf32>
    %17 = arith.truncf %9 : vector<2x32xf32> to vector<2x32xbf16>
    %cst_23 = arith.constant dense<0.000000e+00> : vector<2x128xf32>
    %18 = tpu.matmul %17, %4, %cst_23 {dimension_numbers = #tpu.dot_dimension_numbers<[1], [0], [0], [1], [0, 0, 1, 1], [], []>} : vector<2x32xbf16>, vector<32x128xbf16>, vector<2x128xf32> -> vector<2x128xf32>
    %19 = arith.addf %16, %18 : vector<2x128xf32>
    %20 = vector.broadcast %7 : vector<1x128xf32> to vector<2x128xf32>
    %21 = arith.addf %19, %20 : vector<2x128xf32>
    %22 = math.tanh %21 : vector<2x128xf32>
    %23 = vector.extract_strided_slice %22 {offsets = [0, 0], sizes = [2, 96], strides = [1, 1]} : vector<2x128xf32> to vector<2x96xf32>
    %cst_24 = arith.constant 5.000000e-01 : f32
    %24 = vector.broadcast %cst_24 : f32 to vector<2x96xf32>
    %25 = arith.mulf %24, %23 : vector<2x96xf32>
    %cst_25 = arith.constant 5.000000e-01 : f32
    %26 = vector.broadcast %cst_25 : f32 to vector<2x96xf32>
    %27 = arith.addf %25, %26 : vector<2x96xf32>
    %28 = vector.extract_strided_slice %22 {offsets = [0, 96], sizes = [2, 32], strides = [1, 1]} : vector<2x128xf32> to vector<2x32xf32>
    %29 = vector.extract_strided_slice %27 {offsets = [0, 0], sizes = [2, 32], strides = [1, 1]} : vector<2x96xf32> to vector<2x32xf32>
    %30 = vector.extract_strided_slice %27 {offsets = [0, 32], sizes = [2, 32], strides = [1, 1]} : vector<2x96xf32> to vector<2x32xf32>
    %31 = vector.extract_strided_slice %27 {offsets = [0, 64], sizes = [2, 32], strides = [1, 1]} : vector<2x96xf32> to vector<2x32xf32>
    %32 = arith.mulf %30, %10 : vector<2x32xf32>
    %33 = arith.mulf %29, %28 : vector<2x32xf32>
    %34 = arith.addf %32, %33 : vector<2x32xf32>
    %35 = math.tanh %34 : vector<2x32xf32>
    %36 = arith.mulf %31, %35 : vector<2x32xf32>
    %37 = arith.truncf %36 : vector<2x32xf32> to vector<2x32xbf16>
    %cst_26 = arith.constant dense<0.000000e+00> : vector<2x128xf32>
    %38 = tpu.matmul %37, %5, %cst_26 {dimension_numbers = #tpu.dot_dimension_numbers<[1], [0], [0], [1], [0, 0, 1, 1], [], []>} : vector<2x32xbf16>, vector<32x128xbf16>, vector<2x128xf32> -> vector<2x128xf32>
    %39 = arith.truncf %11 : vector<2x32xf32> to vector<2x32xbf16>
    %cst_27 = arith.constant dense<0.000000e+00> : vector<2x128xf32>
    %40 = tpu.matmul %39, %6, %cst_27 {dimension_numbers = #tpu.dot_dimension_numbers<[1], [0], [0], [1], [0, 0, 1, 1], [], []>} : vector<2x32xbf16>, vector<32x128xbf16>, vector<2x128xf32> -> vector<2x128xf32>
    %41 = arith.addf %38, %40 : vector<2x128xf32>
    %42 = vector.broadcast %8 : vector<1x128xf32> to vector<2x128xf32>
    %43 = arith.addf %41, %42 : vector<2x128xf32>
    %44 = math.tanh %43 : vector<2x128xf32>
    %45 = vector.extract_strided_slice %44 {offsets = [0, 0], sizes = [2, 96], strides = [1, 1]} : vector<2x128xf32> to vector<2x96xf32>
    %cst_28 = arith.constant 5.000000e-01 : f32
    %46 = vector.broadcast %cst_28 : f32 to vector<2x96xf32>
    %47 = arith.mulf %46, %45 : vector<2x96xf32>
    %cst_29 = arith.constant 5.000000e-01 : f32
    %48 = vector.broadcast %cst_29 : f32 to vector<2x96xf32>
    %49 = arith.addf %47, %48 : vector<2x96xf32>
    %50 = vector.extract_strided_slice %44 {offsets = [0, 96], sizes = [2, 32], strides = [1, 1]} : vector<2x128xf32> to vector<2x32xf32>
    %51 = vector.extract_strided_slice %49 {offsets = [0, 0], sizes = [2, 32], strides = [1, 1]} : vector<2x96xf32> to vector<2x32xf32>
    %52 = vector.extract_strided_slice %49 {offsets = [0, 32], sizes = [2, 32], strides = [1, 1]} : vector<2x96xf32> to vector<2x32xf32>
    %53 = vector.extract_strided_slice %49 {offsets = [0, 64], sizes = [2, 32], strides = [1, 1]} : vector<2x96xf32> to vector<2x32xf32>
    %54 = arith.mulf %52, %12 : vector<2x32xf32>
    %55 = arith.mulf %51, %50 : vector<2x32xf32>
    %56 = arith.addf %54, %55 : vector<2x32xf32>
    %57 = math.tanh %56 : vector<2x32xf32>
    %58 = arith.mulf %53, %57 : vector<2x32xf32>
    %c1_i32 = arith.constant 1 : i32
    %59 = arith.index_cast %c1_i32 : i32 to index
    %c0_30 = arith.constant 0 : index
    %c0_31 = arith.constant 0 : index
    %60 = vector.load %arg2[%59, %c0_30, %c0_31] : memref<4x2x16xbf16, #tpu.memory_space<vmem>>, vector<1x2x16xbf16>
    %61 = vector.shape_cast %60 : vector<1x2x16xbf16> to vector<2x16xbf16>
    %cst_32 = arith.constant dense<0.000000e+00> : vector<2x128xf32>
    %62 = tpu.matmul %61, %3, %cst_32 {dimension_numbers = #tpu.dot_dimension_numbers<[1], [0], [0], [1], [0, 0, 1, 1], [], []>} : vector<2x16xbf16>, vector<16x128xbf16>, vector<2x128xf32> -> vector<2x128xf32>
    %63 = arith.truncf %36 : vector<2x32xf32> to vector<2x32xbf16>
    %cst_33 = arith.constant dense<0.000000e+00> : vector<2x128xf32>
    %64 = tpu.matmul %63, %4, %cst_33 {dimension_numbers = #tpu.dot_dimension_numbers<[1], [0], [0], [1], [0, 0, 1, 1], [], []>} : vector<2x32xbf16>, vector<32x128xbf16>, vector<2x128xf32> -> vector<2x128xf32>
    %65 = arith.addf %62, %64 : vector<2x128xf32>
    %66 = vector.broadcast %7 : vector<1x128xf32> to vector<2x128xf32>
    %67 = arith.addf %65, %66 : vector<2x128xf32>
    %68 = math.tanh %67 : vector<2x128xf32>
    %69 = vector.extract_strided_slice %68 {offsets = [0, 0], sizes = [2, 96], strides = [1, 1]} : vector<2x128xf32> to vector<2x96xf32>
    %cst_34 = arith.constant 5.000000e-01 : f32
    %70 = vector.broadcast %cst_34 : f32 to vector<2x96xf32>
    %71 = arith.mulf %70, %69 : vector<2x96xf32>
    %cst_35 = arith.constant 5.000000e-01 : f32
    %72 = vector.broadcast %cst_35 : f32 to vector<2x96xf32>
    %73 = arith.addf %71, %72 : vector<2x96xf32>
    %74 = vector.extract_strided_slice %68 {offsets = [0, 96], sizes = [2, 32], strides = [1, 1]} : vector<2x128xf32> to vector<2x32xf32>
    %75 = vector.extract_strided_slice %73 {offsets = [0, 0], sizes = [2, 32], strides = [1, 1]} : vector<2x96xf32> to vector<2x32xf32>
    %76 = vector.extract_strided_slice %73 {offsets = [0, 32], sizes = [2, 32], strides = [1, 1]} : vector<2x96xf32> to vector<2x32xf32>
    %77 = vector.extract_strided_slice %73 {offsets = [0, 64], sizes = [2, 32], strides = [1, 1]} : vector<2x96xf32> to vector<2x32xf32>
    %78 = arith.mulf %76, %34 : vector<2x32xf32>
    %79 = arith.mulf %75, %74 : vector<2x32xf32>
    %80 = arith.addf %78, %79 : vector<2x32xf32>
    %81 = math.tanh %80 : vector<2x32xf32>
    %82 = arith.mulf %77, %81 : vector<2x32xf32>
    %83 = arith.truncf %82 : vector<2x32xf32> to vector<2x32xbf16>
    %cst_36 = arith.constant dense<0.000000e+00> : vector<2x128xf32>
    %84 = tpu.matmul %83, %5, %cst_36 {dimension_numbers = #tpu.dot_dimension_numbers<[1], [0], [0], [1], [0, 0, 1, 1], [], []>} : vector<2x32xbf16>, vector<32x128xbf16>, vector<2x128xf32> -> vector<2x128xf32>
    %85 = arith.truncf %58 : vector<2x32xf32> to vector<2x32xbf16>
    %cst_37 = arith.constant dense<0.000000e+00> : vector<2x128xf32>
    %86 = tpu.matmul %85, %6, %cst_37 {dimension_numbers = #tpu.dot_dimension_numbers<[1], [0], [0], [1], [0, 0, 1, 1], [], []>} : vector<2x32xbf16>, vector<32x128xbf16>, vector<2x128xf32> -> vector<2x128xf32>
    %87 = arith.addf %84, %86 : vector<2x128xf32>
    %88 = vector.broadcast %8 : vector<1x128xf32> to vector<2x128xf32>
    %89 = arith.addf %87, %88 : vector<2x128xf32>
    %90 = math.tanh %89 : vector<2x128xf32>
    %91 = vector.extract_strided_slice %90 {offsets = [0, 0], sizes = [2, 96], strides = [1, 1]} : vector<2x128xf32> to vector<2x96xf32>
    %cst_38 = arith.constant 5.000000e-01 : f32
    %92 = vector.broadcast %cst_38 : f32 to vector<2x96xf32>
    %93 = arith.mulf %92, %91 : vector<2x96xf32>
    %cst_39 = arith.constant 5.000000e-01 : f32
    %94 = vector.broadcast %cst_39 : f32 to vector<2x96xf32>
    %95 = arith.addf %93, %94 : vector<2x96xf32>
    %96 = vector.extract_strided_slice %90 {offsets = [0, 96], sizes = [2, 32], strides = [1, 1]} : vector<2x128xf32> to vector<2x32xf32>
    %97 = vector.extract_strided_slice %95 {offsets = [0, 0], sizes = [2, 32], strides = [1, 1]} : vector<2x96xf32> to vector<2x32xf32>
    %98 = vector.extract_strided_slice %95 {offsets = [0, 32], sizes = [2, 32], strides = [1, 1]} : vector<2x96xf32> to vector<2x32xf32>
    %99 = vector.extract_strided_slice %95 {offsets = [0, 64], sizes = [2, 32], strides = [1, 1]} : vector<2x96xf32> to vector<2x32xf32>
    %100 = arith.mulf %98, %56 : vector<2x32xf32>
    %101 = arith.mulf %97, %96 : vector<2x32xf32>
    %102 = arith.addf %100, %101 : vector<2x32xf32>
    %103 = math.tanh %102 : vector<2x32xf32>
    %104 = arith.mulf %99, %103 : vector<2x32xf32>
    %c2_i32 = arith.constant 2 : i32
    %105 = arith.index_cast %c2_i32 : i32 to index
    %c0_40 = arith.constant 0 : index
    %c0_41 = arith.constant 0 : index
    %106 = vector.load %arg2[%105, %c0_40, %c0_41] : memref<4x2x16xbf16, #tpu.memory_space<vmem>>, vector<1x2x16xbf16>
    %107 = vector.shape_cast %106 : vector<1x2x16xbf16> to vector<2x16xbf16>
    %cst_42 = arith.constant dense<0.000000e+00> : vector<2x128xf32>
    %108 = tpu.matmul %107, %3, %cst_42 {dimension_numbers = #tpu.dot_dimension_numbers<[1], [0], [0], [1], [0, 0, 1, 1], [], []>} : vector<2x16xbf16>, vector<16x128xbf16>, vector<2x128xf32> -> vector<2x128xf32>
    %109 = arith.truncf %82 : vector<2x32xf32> to vector<2x32xbf16>
    %cst_43 = arith.constant dense<0.000000e+00> : vector<2x128xf32>
    %110 = tpu.matmul %109, %4, %cst_43 {dimension_numbers = #tpu.dot_dimension_numbers<[1], [0], [0], [1], [0, 0, 1, 1], [], []>} : vector<2x32xbf16>, vector<32x128xbf16>, vector<2x128xf32> -> vector<2x128xf32>
    %111 = arith.addf %108, %110 : vector<2x128xf32>
    %112 = vector.broadcast %7 : vector<1x128xf32> to vector<2x128xf32>
    %113 = arith.addf %111, %112 : vector<2x128xf32>
    %114 = math.tanh %113 : vector<2x128xf32>
    %115 = vector.extract_strided_slice %114 {offsets = [0, 0], sizes = [2, 96], strides = [1, 1]} : vector<2x128xf32> to vector<2x96xf32>
    %cst_44 = arith.constant 5.000000e-01 : f32
    %116 = vector.broadcast %cst_44 : f32 to vector<2x96xf32>
    %117 = arith.mulf %116, %115 : vector<2x96xf32>
    %cst_45 = arith.constant 5.000000e-01 : f32
    %118 = vector.broadcast %cst_45 : f32 to vector<2x96xf32>
    %119 = arith.addf %117, %118 : vector<2x96xf32>
    %120 = vector.extract_strided_slice %114 {offsets = [0, 96], sizes = [2, 32], strides = [1, 1]} : vector<2x128xf32> to vector<2x32xf32>
    %121 = vector.extract_strided_slice %119 {offsets = [0, 0], sizes = [2, 32], strides = [1, 1]} : vector<2x96xf32> to vector<2x32xf32>
    %122 = vector.extract_strided_slice %119 {offsets = [0, 32], sizes = [2, 32], strides = [1, 1]} : vector<2x96xf32> to vector<2x32xf32>
    %123 = vector.extract_strided_slice %119 {offsets = [0, 64], sizes = [2, 32], strides = [1, 1]} : vector<2x96xf32> to vector<2x32xf32>
    %124 = arith.mulf %122, %80 : vector<2x32xf32>
    %125 = arith.mulf %121, %120 : vector<2x32xf32>
    %126 = arith.addf %124, %125 : vector<2x32xf32>
    %127 = math.tanh %126 : vector<2x32xf32>
    %128 = arith.mulf %123, %127 : vector<2x32xf32>
    %129 = arith.truncf %128 : vector<2x32xf32> to vector<2x32xbf16>
    %cst_46 = arith.constant dense<0.000000e+00> : vector<2x128xf32>
    %130 = tpu.matmul %129, %5, %cst_46 {dimension_numbers = #tpu.dot_dimension_numbers<[1], [0], [0], [1], [0, 0, 1, 1], [], []>} : vector<2x32xbf16>, vector<32x128xbf16>, vector<2x128xf32> -> vector<2x128xf32>
    %131 = arith.truncf %104 : vector<2x32xf32> to vector<2x32xbf16>
    %cst_47 = arith.constant dense<0.000000e+00> : vector<2x128xf32>
    %132 = tpu.matmul %131, %6, %cst_47 {dimension_numbers = #tpu.dot_dimension_numbers<[1], [0], [0], [1], [0, 0, 1, 1], [], []>} : vector<2x32xbf16>, vector<32x128xbf16>, vector<2x128xf32> -> vector<2x128xf32>
    %133 = arith.addf %130, %132 : vector<2x128xf32>
    %134 = vector.broadcast %8 : vector<1x128xf32> to vector<2x128xf32>
    %135 = arith.addf %133, %134 : vector<2x128xf32>
    %136 = math.tanh %135 : vector<2x128xf32>
    %137 = vector.extract_strided_slice %136 {offsets = [0, 0], sizes = [2, 96], strides = [1, 1]} : vector<2x128xf32> to vector<2x96xf32>
    %cst_48 = arith.constant 5.000000e-01 : f32
    %138 = vector.broadcast %cst_48 : f32 to vector<2x96xf32>
    %139 = arith.mulf %138, %137 : vector<2x96xf32>
    %cst_49 = arith.constant 5.000000e-01 : f32
    %140 = vector.broadcast %cst_49 : f32 to vector<2x96xf32>
    %141 = arith.addf %139, %140 : vector<2x96xf32>
    %142 = vector.extract_strided_slice %136 {offsets = [0, 96], sizes = [2, 32], strides = [1, 1]} : vector<2x128xf32> to vector<2x32xf32>
    %143 = vector.extract_strided_slice %141 {offsets = [0, 0], sizes = [2, 32], strides = [1, 1]} : vector<2x96xf32> to vector<2x32xf32>
    %144 = vector.extract_strided_slice %141 {offsets = [0, 32], sizes = [2, 32], strides = [1, 1]} : vector<2x96xf32> to vector<2x32xf32>
    %145 = vector.extract_strided_slice %141 {offsets = [0, 64], sizes = [2, 32], strides = [1, 1]} : vector<2x96xf32> to vector<2x32xf32>
    %146 = arith.mulf %144, %102 : vector<2x32xf32>
    %147 = arith.mulf %143, %142 : vector<2x32xf32>
    %148 = arith.addf %146, %147 : vector<2x32xf32>
    %149 = math.tanh %148 : vector<2x32xf32>
    %150 = arith.mulf %145, %149 : vector<2x32xf32>
    %c3_i32 = arith.constant 3 : i32
    %151 = arith.index_cast %c3_i32 : i32 to index
    %c0_50 = arith.constant 0 : index
    %c0_51 = arith.constant 0 : index
    %152 = vector.load %arg2[%151, %c0_50, %c0_51] : memref<4x2x16xbf16, #tpu.memory_space<vmem>>, vector<1x2x16xbf16>
    %153 = vector.shape_cast %152 : vector<1x2x16xbf16> to vector<2x16xbf16>
    %cst_52 = arith.constant dense<0.000000e+00> : vector<2x128xf32>
    %154 = tpu.matmul %153, %3, %cst_52 {dimension_numbers = #tpu.dot_dimension_numbers<[1], [0], [0], [1], [0, 0, 1, 1], [], []>} : vector<2x16xbf16>, vector<16x128xbf16>, vector<2x128xf32> -> vector<2x128xf32>
    %155 = arith.truncf %128 : vector<2x32xf32> to vector<2x32xbf16>
    %cst_53 = arith.constant dense<0.000000e+00> : vector<2x128xf32>
    %156 = tpu.matmul %155, %4, %cst_53 {dimension_numbers = #tpu.dot_dimension_numbers<[1], [0], [0], [1], [0, 0, 1, 1], [], []>} : vector<2x32xbf16>, vector<32x128xbf16>, vector<2x128xf32> -> vector<2x128xf32>
    %157 = arith.addf %154, %156 : vector<2x128xf32>
    %158 = vector.broadcast %7 : vector<1x128xf32> to vector<2x128xf32>
    %159 = arith.addf %157, %158 : vector<2x128xf32>
    %160 = math.tanh %159 : vector<2x128xf32>
    %161 = vector.extract_strided_slice %160 {offsets = [0, 0], sizes = [2, 96], strides = [1, 1]} : vector<2x128xf32> to vector<2x96xf32>
    %cst_54 = arith.constant 5.000000e-01 : f32
    %162 = vector.broadcast %cst_54 : f32 to vector<2x96xf32>
    %163 = arith.mulf %162, %161 : vector<2x96xf32>
    %cst_55 = arith.constant 5.000000e-01 : f32
    %164 = vector.broadcast %cst_55 : f32 to vector<2x96xf32>
    %165 = arith.addf %163, %164 : vector<2x96xf32>
    %166 = vector.extract_strided_slice %160 {offsets = [0, 96], sizes = [2, 32], strides = [1, 1]} : vector<2x128xf32> to vector<2x32xf32>
    %167 = vector.extract_strided_slice %165 {offsets = [0, 0], sizes = [2, 32], strides = [1, 1]} : vector<2x96xf32> to vector<2x32xf32>
    %168 = vector.extract_strided_slice %165 {offsets = [0, 32], sizes = [2, 32], strides = [1, 1]} : vector<2x96xf32> to vector<2x32xf32>
    %169 = vector.extract_strided_slice %165 {offsets = [0, 64], sizes = [2, 32], strides = [1, 1]} : vector<2x96xf32> to vector<2x32xf32>
    %170 = arith.mulf %168, %126 : vector<2x32xf32>
    %171 = arith.mulf %167, %166 : vector<2x32xf32>
    %172 = arith.addf %170, %171 : vector<2x32xf32>
    %173 = math.tanh %172 : vector<2x32xf32>
    %174 = arith.mulf %169, %173 : vector<2x32xf32>
    %175 = arith.truncf %174 : vector<2x32xf32> to vector<2x32xbf16>
    %cst_56 = arith.constant dense<0.000000e+00> : vector<2x128xf32>
    %176 = tpu.matmul %175, %5, %cst_56 {dimension_numbers = #tpu.dot_dimension_numbers<[1], [0], [0], [1], [0, 0, 1, 1], [], []>} : vector<2x32xbf16>, vector<32x128xbf16>, vector<2x128xf32> -> vector<2x128xf32>
    %177 = arith.truncf %150 : vector<2x32xf32> to vector<2x32xbf16>
    %cst_57 = arith.constant dense<0.000000e+00> : vector<2x128xf32>
    %178 = tpu.matmul %177, %6, %cst_57 {dimension_numbers = #tpu.dot_dimension_numbers<[1], [0], [0], [1], [0, 0, 1, 1], [], []>} : vector<2x32xbf16>, vector<32x128xbf16>, vector<2x128xf32> -> vector<2x128xf32>
    %179 = arith.addf %176, %178 : vector<2x128xf32>
    %180 = vector.broadcast %8 : vector<1x128xf32> to vector<2x128xf32>
    %181 = arith.addf %179, %180 : vector<2x128xf32>
    %182 = math.tanh %181 : vector<2x128xf32>
    %183 = vector.extract_strided_slice %182 {offsets = [0, 0], sizes = [2, 96], strides = [1, 1]} : vector<2x128xf32> to vector<2x96xf32>
    %cst_58 = arith.constant 5.000000e-01 : f32
    %184 = vector.broadcast %cst_58 : f32 to vector<2x96xf32>
    %185 = arith.mulf %184, %183 : vector<2x96xf32>
    %cst_59 = arith.constant 5.000000e-01 : f32
    %186 = vector.broadcast %cst_59 : f32 to vector<2x96xf32>
    %187 = arith.addf %185, %186 : vector<2x96xf32>
    %188 = vector.extract_strided_slice %182 {offsets = [0, 96], sizes = [2, 32], strides = [1, 1]} : vector<2x128xf32> to vector<2x32xf32>
    %189 = vector.extract_strided_slice %187 {offsets = [0, 0], sizes = [2, 32], strides = [1, 1]} : vector<2x96xf32> to vector<2x32xf32>
    %190 = vector.extract_strided_slice %187 {offsets = [0, 32], sizes = [2, 32], strides = [1, 1]} : vector<2x96xf32> to vector<2x32xf32>
    %191 = vector.extract_strided_slice %187 {offsets = [0, 64], sizes = [2, 32], strides = [1, 1]} : vector<2x96xf32> to vector<2x32xf32>
    %192 = arith.mulf %190, %148 : vector<2x32xf32>
    %193 = arith.mulf %189, %188 : vector<2x32xf32>
    %194 = arith.addf %192, %193 : vector<2x32xf32>
    %195 = math.tanh %194 : vector<2x32xf32>
    %196 = arith.mulf %191, %195 : vector<2x32xf32>
    %c4_i32 = arith.constant 4 : i32
    %c0_60 = arith.constant 0 : index
    %c0_61 = arith.constant 0 : index
    %197 = vector.load %arg12[%c0_60, %c0_61] : memref<2x32xf32, #tpu.memory_space<vmem>>, vector<2x32xf32>
    tpu.vector_store %arg12[%c0_60, %c0_61], %174 {strides = array<i32>} : memref<2x32xf32, #tpu.memory_space<vmem>>, vector<2x32xf32>,
    %c0_62 = arith.constant 0 : index
    %c0_63 = arith.constant 0 : index
    %198 = vector.load %arg13[%c0_62, %c0_63] : memref<2x32xf32, #tpu.memory_space<vmem>>, vector<2x32xf32>
    tpu.vector_store %arg13[%c0_62, %c0_63], %172 {strides = array<i32>} : memref<2x32xf32, #tpu.memory_space<vmem>>, vector<2x32xf32>,
    %c0_64 = arith.constant 0 : index
    %c0_65 = arith.constant 0 : index
    %199 = vector.load %arg14[%c0_64, %c0_65] : memref<2x32xf32, #tpu.memory_space<vmem>>, vector<2x32xf32>
    tpu.vector_store %arg14[%c0_64, %c0_65], %196 {strides = array<i32>} : memref<2x32xf32, #tpu.memory_space<vmem>>, vector<2x32xf32>,
    %c0_66 = arith.constant 0 : index
    %c0_67 = arith.constant 0 : index
    %200 = vector.load %arg15[%c0_66, %c0_67] : memref<2x32xf32, #tpu.memory_space<vmem>>, vector<2x32xf32>
    tpu.vector_store %arg15[%c0_66, %c0_67], %194 {strides = array<i32>} : memref<2x32xf32, #tpu.memory_space<vmem>>, vector<2x32xf32>,
    %c1_i32_68 = arith.constant 1 : i32
    %201 = arith.cmpi eq, %arg1, %c1_i32_68 : i32
    %202 = arith.extui %201 : i1 to i32
    %c0_i32_69 = arith.constant 0 : i32
    %203 = arith.cmpi ne, %202, %c0_i32_69 : i32
    scf.if %203 {
      %c0_70 = arith.constant 0 : index
      %c0_71 = arith.constant 0 : index
      %204 = vector.load %arg9[%c0_70, %c0_71] : memref<1x32xf32, #tpu.memory_space<vmem>>, vector<1x32xf32>
      %205 = vector.broadcast %204 : vector<1x32xf32> to vector<2x32xf32>
      %206 = arith.mulf %196, %205 : vector<2x32xf32>
      %cst_72 = arith.constant dense<0.000000e+00> : vector<2xf32>
      %207 = vector.multi_reduction <add>, %206, %cst_72 [1] : vector<2x32xf32> to vector<2xf32>
      %208 = vector.shape_cast %207 : vector<2xf32> to vector<2x1xf32>
      %c0_73 = arith.constant 0 : index
      %c0_74 = arith.constant 0 : index
      %209 = vector.load %arg10[%c0_73, %c0_74] : memref<1x1xf32, #tpu.memory_space<vmem>>, vector<1x1xf32>
      %210 = vector.broadcast %209 : vector<1x1xf32> to vector<2x1xf32>
      %211 = arith.addf %208, %210 : vector<2x1xf32>
      %c0_75 = arith.constant 0 : index
      %c0_76 = arith.constant 0 : index
      %212 = vector.load %arg11[%c0_75, %c0_76] : memref<2x1xf32, #tpu.memory_space<vmem>>, vector<2x1xf32>
      tpu.vector_store %arg11[%c0_75, %c0_76], %211 {strides = array<i32>} : memref<2x1xf32, #tpu.memory_space<vmem>>, vector<2x1xf32>,
    } else {
    }
    return
  }
  func.func @transform_0(%arg0: i32, %arg1: i32) -> (i32, i32, i32) {
    %c0_i32 = arith.constant 0 : i32
    %c0_i32_0 = arith.constant 0 : i32
    return %arg1, %arg0, %c0_i32 : i32, i32, i32
  }
  func.func @transform_1(%arg0: i32, %arg1: i32) -> (i32, i32) {
    %c0_i32 = arith.constant 0 : i32
    %c0_i32_0 = arith.constant 0 : i32
    %c0_i32_1 = arith.constant 0 : i32
    return %c0_i32, %c0_i32_0 : i32, i32
  }
  func.func @transform_2(%arg0: i32, %arg1: i32) -> (i32, i32) {
    %c0_i32 = arith.constant 0 : i32
    %c0_i32_0 = arith.constant 0 : i32
    %c0_i32_1 = arith.constant 0 : i32
    return %c0_i32, %c0_i32_0 : i32, i32
  }
  func.func @transform_3(%arg0: i32, %arg1: i32) -> (i32, i32) {
    %c0_i32 = arith.constant 0 : i32
    %c0_i32_0 = arith.constant 0 : i32
    %c0_i32_1 = arith.constant 0 : i32
    return %c0_i32, %c0_i32_0 : i32, i32
  }
  func.func @transform_4(%arg0: i32, %arg1: i32) -> (i32, i32) {
    %c0_i32 = arith.constant 0 : i32
    %c0_i32_0 = arith.constant 0 : i32
    %c0_i32_1 = arith.constant 0 : i32
    return %c0_i32, %c0_i32_0 : i32, i32
  }
  func.func @transform_5(%arg0: i32, %arg1: i32) -> (i32, i32) {
    %c0_i32 = arith.constant 0 : i32
    %c0_i32_0 = arith.constant 0 : i32
    %c0_i32_1 = arith.constant 0 : i32
    return %c0_i32, %c0_i32_0 : i32, i32
  }
  func.func @transform_6(%arg0: i32, %arg1: i32) -> (i32, i32) {
    %c0_i32 = arith.constant 0 : i32
    %c0_i32_0 = arith.constant 0 : i32
    %c0_i32_1 = arith.constant 0 : i32
    return %c0_i32, %c0_i32_0 : i32, i32
  }
  func.func @transform_7(%arg0: i32, %arg1: i32) -> (i32, i32) {
    %c0_i32 = arith.constant 0 : i32
    %c0_i32_0 = arith.constant 0 : i32
    %c0_i32_1 = arith.constant 0 : i32
    return %c0_i32, %c0_i32_0 : i32, i32
  }
  func.func @transform_8(%arg0: i32, %arg1: i32) -> (i32, i32) {
    %c0_i32 = arith.constant 0 : i32
    %c0_i32_0 = arith.constant 0 : i32
    %c0_i32_1 = arith.constant 0 : i32
    return %c0_i32, %c0_i32_0 : i32, i32
  }
  func.func @transform_9(%arg0: i32, %arg1: i32) -> (i32, i32) {
    %c0_i32 = arith.constant 0 : i32
    %c0_i32_0 = arith.constant 0 : i32
    return %arg0, %c0_i32 : i32, i32
  }
}

</mosaic_0001>

<bundles_post_ra>
// kernel: tpu_custom_call.1
= control target key start
LH: loop header
LB: loop body
LE: loop exit
PB: predicated region body
PF: predicated region fallthrough
CT: control target
= control target key end

     0   :  { %s2581_s0 = inlined_call_operand.hbm [shape: bf16[8,2,16], index: 0, kind: input, shape index: {}]   ;;  %s2582_s1 = inlined_call_operand.hbm [shape: bf16[16,128], index: 1, kind: input, shape index: {}]   ;;  %s2583_s2 = inlined_call_operand.hbm [shape: bf16[32,128], index: 2, kind: input, shape index: {}]   ;;  %s2584_s3 = inlined_call_operand.vmem [shape: f32[1,128], index: 3, kind: input, shape index: {}]   ;;  %s2585_s4 = inlined_call_operand.vmem [shape: bf16[32,128], index: 4, kind: input, shape index: {}]   ;;  %s2586_s5 = inlined_call_operand.hbm [shape: bf16[32,128], index: 5, kind: input, shape index: {}]   ;;  %s2587_s6 = inlined_call_operand.vmem [shape: f32[1,128], index: 6, kind: input, shape index: {}]   ;;  %s2588_s7 = inlined_call_operand.vmem [shape: f32[1,32], index: 7, kind: input, shape index: {}]   ;;  %s2589_s8 = inlined_call_operand.<no memory space> [shape: f32[1,1], index: 8, kind: input, shape index: {}]   ;;  %s2590_s9 = inlined_call_operand.vmem [shape: f32[2,1], index: 9, kind: output, shape index: {}]  }
   0x1   :  { %2595 = sst [smem:[#allocation17_spill]] %s2588_s7  ;;  %v14_v0 = vstv %s2589_s8 }
   0x2   :  { %2596 = sst [smem:[#allocation18_spill]] %s2590_s9  ;;  %15 = vst [vmem:[#allocation6] sm:$0x1] %v14_v0 }
   0x3   :  { %16 = vsyncpa [#allocation8], 0 }
   0x4   :  { %18 = vsyncpa [#allocation8 + $0x1], 0 }
   0x5   :  { %19 = vsyncpa [#allocation10], 0 }
   0x6   :  { %20 = vsyncpa [#allocation13], 0  ;;  %s2136_s11 = smov 0   ;;  %s2138_s12 = smov 0  }
   0x7   :  { %s2140_s13 = smov 0   ;;  %s2142_s14 = smov 0  }
   0x8   :  { %s2144_s15 = smov 0   ;;  %s2146_s16 = smov 0  }
   0x9 LB: > { %s1544_s8 = sadd.s32 4294967295, %s2066_s16   ;;  %p60_p0 = scmp.ne.s32.totalorder %s2050_s12, %s2046_s11  ;;  %s2066_s16 = sphi %s2146_s16, %s26_s16   ;;  %s2062_s15 = sphi %s2144_s15, %s2612_s15   ;;  %s2058_s14 = sphi %s2142_s14, %s2611_s14   ;;  %s2054_s13 = sphi %s2140_s13, %s2610_s13   ;;  %s2050_s12 = sphi %s2138_s12, %s2609_s12   ;;  %s2046_s11 = sphi %s2136_s11, %s2608_s11  }
   0xa   : > { %p2166_p1 = scmp.eq.s32.totalorder %s1544_s8, 0  ;;  %p1545_p2 = scmp.ge.s32.totalorder %s2066_s16, 1 }
   0xb   : > { %p265_p3 = scmp.lt.s32.totalorder %s2066_s16, 3  ;;  %s2068_s20 = smov [#allocation9]  }
   0xc   : > { %s2597_s17 = scalar_select %p2166_p1, 1, 0 }
   0xd   : > { %p2174_p4 = por %p2166_p1, %p60_p0  ;;  %p2178_p5 = pnand %p1545_p2, %p265_p3 }
   0xe   : > { %s277_s21 = sshll.u32 %s2068_s20, 4  ;;  %s2069_s23 = smov [#allocation11]   ;;  %s2182_s21 = int_to_ptr.vmem [resolvable:$true] %s277_s21 }
   0xf   : > { %s2598_s18 = scalar_select %p2174_p4, 1, 0 }
  0x10   : > { %s2599_s19 = scalar_select %p2178_p5, 1, 0 }
  0x11   : > { %p1772_p6 = pneg %p2178_p5  ;;  %s290_s24 = sshll.u32 %s2069_s23, 4  ;;  %s2192_s24 = int_to_ptr.vmem [resolvable:$true] %s290_s24 }
  0x12   : > { %s2070_s25 = smov [#allocation12]   ;;  %s1894_s29 = scalar_lea.hbm %s2582_s1, 128 }
  0x13   : > { %p2188_p7 = pnand %p1772_p6, %p2166_p1  ;;  %s2194_s26 = sshll.u32 %s2070_s25, 4  ;;  %s310_s26 = int_to_ptr.vmem [resolvable:$true] %s2194_s26 }
  0x14   : > { %p1895_p8 = scmp.ne.s32.totalorder %s2582_s1, %s1894_s29  ;;  %p1901_p12 = scmp.lt.u32.totalorder %s1894_s29, %s2582_s1 }
  0x15   : > { %p2204_p9 = pneg %p2188_p7 }
  0x17   : > { %p1897_p10 = pnand %p2204_p9, %p1895_p8 }
  0x19   : > { %p1898_p11 = pneg %p1897_p10 }
  0x1b   : > { %p1903_p13 = pnand %p1901_p12, %p1898_p11 }
  0x1d   : > { %1906 = shalt.err (!%p1903_p13)
}
  0x1e   : > { %s1907_s23 = scalar_lea.vmem %s2182_s21, 128  ;;  %p1915_p6 = scmp.lt.s32.totalorder %s2182_s21, %s2182_s21 }
  0x1f   : > { %p1908_p0 = scmp.ne.s32.totalorder %s2182_s21, %s1907_s23  ;;  %p1916_p1 = scmp.lt.s32.totalorder %s1907_s23, %s1907_s23 }
  0x21   : > { %p1910_p2 = pnand %p1908_p0, %p2204_p9  ;;  %p1917_p8 = por %p1916_p1, %p1915_p6 }
  0x23   : > { %p1911_p3 = pneg %p1910_p2 }
  0x25   : > { %p1918_p10 = pnand %p1917_p8, %p1911_p3 }
  0x27   : > { %1921 = shalt.err (!%p1918_p10)
}
  0x28   : > { %s2071_s25 = smov 64   ;;  %s2072_s27 = smov 4  }
  0x29   : > { %1775 = dma.hbm_to_vmem [thread:$0]  (!%p2188_p7), %s2582_s1, 128, %s2182_s21, [#allocation10], %s2071_s25, %s2071_s25, %s2072_s27  }
  0x2a   : > { %s1922_s8 = scalar_lea.hbm %s2583_s2, 256 }
  0x2b   : > { %p1923_p1 = scmp.ne.s32.totalorder %s2583_s2, %s1922_s8  ;;  %p1929_p13 = scmp.lt.u32.totalorder %s1922_s8, %s2583_s2 }
  0x2d   : > { %p1925_p11 = pnand %p1923_p1, %p2204_p9 }
  0x2f   : > { %p1926_p12 = pneg %p1925_p11 }
  0x31   : > { %p1931_p0 = pnand %p1929_p13, %p1926_p12 }
  0x33   : > { %1934 = shalt.err (!%p1931_p0)
}
  0x34   : > { %s1935_s21 = scalar_lea.vmem %s2192_s24, 256  ;;  %p1943_p8 = scmp.lt.s32.totalorder %s2192_s24, %s2192_s24 }
  0x35   : > { %p1936_p2 = scmp.ne.s32.totalorder %s2192_s24, %s1935_s21  ;;  %p1944_p10 = scmp.lt.s32.totalorder %s1935_s21, %s1935_s21 }
  0x37   : > { %p1938_p3 = pnand %p1936_p2, %p2204_p9  ;;  %p1945_p1 = por %p1944_p10, %p1943_p8 }
  0x39   : > { %p1939_p6 = pneg %p1938_p3 }
  0x3b   : > { %p1946_p11 = pnand %p1945_p1, %p1939_p6 }
  0x3d   : > { %1949 = shalt.err (!%p1946_p11)
}
  0x3e   : > { %1778 = dma.hbm_to_vmem [thread:$0]  (!%p2188_p7), %s2583_s2, 256, %s2192_s24, [#allocation10], %s2071_s25, %s2071_s25, %s2072_s27  }
  0x3f   : > { %s1950_s30 = scalar_lea.hbm %s2586_s5, 256 }
  0x40   : > { %p1951_p12 = scmp.ne.s32.totalorder %s2586_s5, %s1950_s30  ;;  %p1957_p2 = scmp.lt.u32.totalorder %s1950_s30, %s2586_s5 }
  0x42   : > { %p1953_p13 = pnand %p1951_p12, %p2204_p9 }
  0x44   : > { %p1954_p0 = pneg %p1953_p13 }
  0x46   : > { %p1959_p3 = pnand %p1957_p2, %p1954_p0 }
  0x48   : > { %1962 = shalt.err (!%p1959_p3)
}
  0x49   : > { %s1963_s21 = scalar_lea.vmem %s310_s26, 256  ;;  %p1971_p1 = scmp.lt.s32.totalorder %s310_s26, %s310_s26 }
  0x4a   : > { %p1964_p6 = scmp.ne.s32.totalorder %s310_s26, %s1963_s21  ;;  %p1972_p11 = scmp.lt.s32.totalorder %s1963_s21, %s1963_s21 }
  0x4c   : > { %p1966_p8 = pnand %p1964_p6, %p2204_p9  ;;  %p1973_p4 = por %p1972_p11, %p1971_p1 }
  0x4e   : > { %p1967_p10 = pneg %p1966_p8 }
  0x50   : > { %p1974_p5 = pnand %p1973_p4, %p1967_p10 }
  0x52   : > { %1977 = shalt.err (!%p1974_p5)
}
  0x53   : > { %1781 = dma.hbm_to_vmem [thread:$0]  (!%p2188_p7), %s2586_s5, 256, %s310_s26, [#allocation13], %s2071_s25, %s2071_s25, %s2072_s27  }
  0x54   : > { %s47_s11 = sadd.s32 1, %s2054_s13  ;;  %s35_s9 = sadd.s32 1, %s2062_s15 }
  0x55   : > { %p54_p4 = scmp.ne.s32.totalorder %s2054_s13, %s2050_s12  ;;  %p36_p5 = scmp.ge.s32.totalorder %s35_s9, 2 }
  0x56   : > { %p55_p9 = scmp.eq.s32.totalorder %s2066_s16, 0  ;;  %p1789_p12 = scmp.lt.s32.totalorder %s2066_s16, 2 }
  0x57   : > { %s332_s22 = sand.u32 1, %s2054_s13   ;;  %s2614_s9 = smov (%p36_p5, %s35_s9), 0 }
  0x58   : > { %p56_p13 = por %p55_p9, %p54_p4  ;;  %s42_s28 = ssub.s32 %s2062_s15, %s2614_s9 }
  0x59   : > { %s1550_s29 = sshll.u32 %s332_s22, 2  ;;  %p45_p0 = scmp.eq.s32.totalorder %s42_s28, 0 }
  0x5a   : > { %s1593_s30 = sshll.u32 %s2062_s15, 6  ;;  %s336_s10 = scalar_lea.vmem [#allocation7], %s1550_s29 }
  0x5b   : > { %s344_s8 = sshll.u32 %s336_s10, 4  ;;  %s2294_s20 = scalar_lea.hbm %s2581_s0, %s1593_s30  ;;  %s2296_s8 = int_to_ptr.vmem [resolvable:$true] %s344_s8 }
  0x5c   : > { %s2289_s26 = scalar_select %p45_p0, %s2054_s13, %s47_s11  }
  0x5d   : > { %p2300_p7 = pnand %p1789_p12, %p56_p13  ;;  %s2304_s21 = scalar_lea.sflag [#allocation8], %s332_s22 }
  0x5e   : > { %s1978_s24 = scalar_lea.hbm %s2294_s20, 64  ;;  %s1983_s28 = scalar_lea.hbm %s2581_s0, 128 }
  0x5f   : > { %p1979_p2 = scmp.ne.s32.totalorder %s2294_s20, %s1978_s24  ;;  %p1980_p3 = pneg %p2300_p7 }
  0x60   : > { %p1984_p10 = scmp.lt.u32.totalorder %s2294_s20, %s2581_s0  ;;  %p1985_p1 = scmp.lt.u32.totalorder %s1983_s28, %s1978_s24 }
  0x61   : > { %p1981_p6 = pnand %p1980_p3, %p1979_p2  ;;  %p1987_p4 = scmp.lt.u32.totalorder %s1978_s24, %s2294_s20 }
  0x62   : > { %p1986_p11 = por %p1985_p1, %p1984_p10 }
  0x63   : > { %p1982_p8 = pneg %p1981_p6 }
  0x64   : > { %p1988_p5 = por %p1987_p4, %p1986_p11 }
  0x66   : > { %p1989_p9 = pnand %p1988_p5, %p1982_p8 }
  0x68   : > { %1992 = shalt.err (!%p1989_p9)
}
  0x69   : > { %s1993_s22 = scalar_lea.vmem %s2296_s8, 64  ;;  %s2073_s10 = smov [#allocation7]  }
  0x6a   : > { %p1994_p12 = scmp.ne.s32.totalorder %s2296_s8, %s1993_s22  ;;  %s1998_s25 = sshll.u32 %s2073_s10, 4  ;;  %s1999_s25 = int_to_ptr.vmem [resolvable:$false] %s1998_s25 }
  0x6b   : > { %s2000_s27 = scalar_lea.vmem %s1999_s25, 128  ;;  %p2001_p2 = scmp.lt.s32.totalorder %s2296_s8, %s1999_s25 }
  0x6c   : > { %p1996_p13 = pnand %p1994_p12, %p1980_p3  ;;  %p2002_p6 = scmp.lt.s32.totalorder %s2000_s27, %s1993_s22 }
  0x6e   : > { %p1997_p0 = pneg %p1996_p13  ;;  %p2003_p10 = por %p2002_p6, %p2001_p2 }
  0x70   : > { %p2004_p1 = pnand %p2003_p10, %p1997_p0 }
  0x72   : > { %2007 = shalt.err (!%p2004_p1)
}
  0x73   : > { %s2074_s24 = smov 16   ;;  %s2075_s7 = smov 1  }
  0x74   : > { %1785 = dma.hbm_to_vmem [thread:$0]  (!%p2300_p7), %s2294_s20, 64, %s2296_s8, %s2304_s21, %s2074_s24, %s2074_s24, %s2075_s7  }
  0x75   : > { %p2603_p3 = scmp.ne.s32.totalorder %s2599_s19, 0 }
  0x76   : > { %s358_s11 = sand.u32 (!%p2603_p3), 1, %s2050_s12   ;;  %p2604_p8 = scmp.ne.s32.totalorder (!%p2603_p3), %s2598_s18, 0 }
  0x77   : > { %356 = sbr.rel (%p2603_p3) target bundleno = 3860 (0xf14), region = 56  ;;  %s1554_s28 = sshll.u32 (!%p2603_p3), %s358_s11, 2 }
  0x78   : > { %s359_s29 = scalar_lea.sflag (!%p2603_p3), [#allocation8], %s358_s11  ;;  %s2335_s30 = scalar_lea.vmem (!%p2603_p3), [#allocation7], %s1554_s28 }
  0x7e   : > { %2033 = dma.done.wait (%p2604_p8), %s359_s29, 64  }
  0x7f   : > { %2035 = vsyncadd (%p2604_p8), %s359_s29, 4294967232  ;;  %p2605_p11 = scmp.ne.s32.totalorder %s2597_s17, 0 }
  0x81   : > { %2037 = dma.done.wait (%p2605_p11), [#allocation10], 384  }
  0x82   : > { %2039 = vsyncadd (%p2605_p11), [#allocation10], 4294966912 }
  0x83   : > { %2041 = dma.done.wait (%p2605_p11), [#allocation13], 256  }
  0x84   : > { %2043 = vsyncadd (%p2605_p11), [#allocation13], 4294967040  ;;  %p1558_p7 = scmp.ne.s32.totalorder %s2058_s14, 0 }
  0x85   : > { %vm418_vm0 = vcmask (!%p1558_p7), 254976   ;;  %v2076_v1 = vmov (!%p1558_p7), 0.0  }
  0x86   : > { %417 = sbr.rel (%p1558_p7) target bundleno = 141 (0x8d), region = 76  ;;  %419 = vst.msk [vmem:[#allocation2] sm:$0x3] (!%p1558_p7), %vm418_vm0, %v2076_v1  ;;  %420 = vst.msk [vmem:[#allocation3] sm:$0x3] (!%p1558_p7), %vm418_vm0, %v2076_v1 }
  0x87   : > { %421 = vst.msk [vmem:[#allocation4] sm:$0x3] (!%p1558_p7), %vm418_vm0, %v2076_v1  ;;  %422 = vst.msk [vmem:[#allocation5] sm:$0x3] (!%p1558_p7), %vm418_vm0, %v2076_v1 }
  0x8d PF: > { %v2350_v2 = vld [vmem:[#allocation11] sm:$0xff]   ;;  %v2077_v3 = vmov 0.0   ;;  %v2354_v4 = vld [vmem:[#allocation9] sm:$0xff]   ;;  %vm2078_vm1 = vmmov 0   ;;  %v2359_v5 = vld [vmem:[#allocation11 + $0x8] sm:$0xff]   ;;  %vm507_vm2 = vcmask 130048  }
  0x8e   : > { %1638 = vmatprep.subr.bf16.mxu0 %v2077_v3  ;;  %1646 = vmatprep.subr.bf16.mxu1 %v2077_v3  ;;  %v443_v6 = vld [vmem:[%s2335_s30] sm:$0x1]  ;;  %v439_v7 = vld [vmem:[#allocation2] sm:$0x3]  ;;  %vm457_vm3 = vcmask 261120   ;;  %s2079_s19 = smov 32  }
  0x8f   : > { %1639 = vmatpush3.bf16.msra.mxu0 %v2350_v2  ;;  %1648 = vmatprep.mubr.msk.bf16.mxu1 %vm2078_vm1, %v2077_v3  ;;  %v444_v8 = vpack.c.bf16 %v439_v7, %v439_v7  ;;  %v2378_v12 = vld [vmem:[%s2584_s3] ss:$0 sm:$0xff]  ;;  %v440_v21 = vld [vmem:[#allocation3] sm:$0x3]  ;;  %v2387_v30 = vld [vmem:[#allocation12] sm:$0xff]   ;;  %s2080_s22 = smov 64  }
  0x90   : > { %1647 = vmatpush3.bf16.msra.mxu1 %v2354_v4  ;;  %1640 = vmatprep.subr.bf16.mxu0 %v2077_v3  ;;  %v2392_v31 = vld [vmem:[%s2585_s4] sm:$0xff]   ;;  %v2395_v32 = vld [vmem:[#allocation12 + $0x8] sm:$0xff]   ;;  %v2402_v34 = vld [vmem:[%s2585_s4 + $0x8] sm:$0xff]   ;;  %vm1395_vm4 = vcmask 254976   ;;  %s2081_s27 = smov 96   ;;  %p1587_p4 = scmp.ne.s32.totalorder %s2058_s14, 1 }
  0x91   : > { %1642 = vmatprep.mubr.msk.bf16.mxu0 %vm2078_vm1, %v2077_v3  ;;  %1652 = vmatprep.subr.bf16.mxu1 %v2077_v3  ;;  %v441_v33 = vld [vmem:[#allocation4] sm:$0x3]  ;;  %v1572_v45 = vld [vmem:[%s2335_s30 + $0x1] sm:$0x1]  ;;  %v2441_v46 = vld [vmem:[%s2587_s6] ss:$0 sm:$0xff] }
  0x92   : > { %v583_v35 = vpack.c.bf16 %v441_v33, %v441_v33  ;;  %v442_v0 = vld [vmem:[#allocation5] sm:$0x3]  ;;  %s2606_s11 = sld [smem:[#allocation17_spill]] (!%p1587_p4)  ;;  %s2082_s28 = smov (!%p1587_p4), 64   ;;  %vm1441_vm5 = vcmask (!%p1587_p4), 1024  }
  0x93   : > { %1641 = vmatpush3.bf16.msra.mxu0 %v2359_v5  ;;  %1649 = vmatmul.mubr.msk.bf16.vlgmr.msra.gmra.mrb[0].mxu1 %vm507_vm2, %v443_v6 }
  0x94   : > { %1656 = vmatprep.mubr.msk.bf16.mxu1 %vm2078_vm1, %v2077_v3  ;;  %1660 = vmatprep.subr.bf16.mxu0 %v2077_v3 }
  0x95   : > { %1653 = vmatpush3.bf16.msra.mxu1 %v2387_v30 }
  0x96   : > { %1643 = vmatmul.mubr.msk.bf16.vlgmr.msra.gmra.mrb[0].mxu0 %vm457_vm3, %v444_v8  ;;  %1654 = vmatprep.subr.bf16.mxu1 %v2077_v3 }
  0x97   : > { %1664 = vmatprep.mubr.msk.bf16.mxu0 %vm2078_vm1, %v2077_v3  ;;  %1661 = vmatpush3.bf16.msra.mxu0 %v2392_v31 }
  0x98   : > { %1662 = vmatprep.subr.bf16.mxu0 %v2077_v3 }
  0x99   : > { %1655 = vmatpush3.bf16.msra.mxu1 %v2395_v32 }
  0x9a   : > { %1668 = vmatprep.subr.bf16.mxu1 %v2077_v3 }
  0x9b   : > { %1663 = vmatpush3.bf16.msra.mxu0 %v2402_v34 }
  0x9c   : > { %1676 = vmatprep.subr.bf16.mxu0 %v2077_v3  ;;  %1657 = vmatmul.mubr.msk.bf16.vlgmr.msra.gmra.mrb[4].mxu1 %vm457_vm3, %v583_v35 }
  0x9d   : > { %1669 = vmatpush3.bf16.msra.mxu1 %v2350_v2  ;;  %1672 = vmatprep.mubr.msk.bf16.mxu1 %vm2078_vm1, %v2077_v3 }
  0x9e   : > { %1670 = vmatprep.subr.bf16.mxu1 %v2077_v3 }
  0xa1   : > { %1671 = vmatpush3.bf16.msra.mxu1 %v2359_v5 }
  0xa2   : > { %1682 = vmatprep.subr.bf16.mxu1 %v2077_v3 }
 0x166   : > { %v545_v9 = vpop.f32.mrb[0].mxu1 }
 0x167   : > { %v1650_v10 = vpop.f32.mrb[1].mxu1 }
 0x168   : > { %v548_v11 = vpop.f32.mrb[2].mxu1 }
 0x169   : > { %v495_v13 = vpop.f32.mrb[0].mxu0  ;;  %v1651_v14 = vpop.f32.mrb[3].mxu1 }
 0x16a   : > { %v546_v15 = vadd.f32 %v545_v9, %v495_v13  ;;  %v1644_v16 = vpop.f32.mrb[1].mxu0 }
 0x16b   : > { %v498_v17 = vpop.f32.mrb[2].mxu0 }
 0x16c   : > { %v557_v18 = vadd.f32 %v2378_v12, %v546_v15  ;;  %v1645_v19 = vpop.f32.mrb[3].mxu0 }
 0x16e   : > { %1862 = vtanh.f32 %v557_v18 }
 0x16f   : > { %v633_v40 = vpop.f32.mrb[4].mxu1 }
 0x170   : > { %v1658_v41 = vpop.f32.mrb[5].mxu1 }
 0x171   : > { %v636_v42 = vpop.f32.mrb[6].mxu1 }
 0x172   : > { %v1659_v43 = vpop.f32.mrb[7].mxu1 }
 0x178   : > { %v1863_v20 = vpop.eup %1862 }
 0x179   : > { %567 = vrot.lane.b32.xlu0 %v1863_v20, %s2079_s19  ;;  %v559_v22 = vmul.f32 0.5, %v1863_v20 }
 0x17b   : > { %v560_v23 = vadd.f32 0.5, %v559_v22 }
 0x17d   : > { %562 = vrot.lane.b32.xlu0 %v440_v21, %s2079_s19 }
 0x1eb   : > { %v568_v24 = vpop.permute.xlu0 %567 }
 0x1ec   : > { %v570_v25 = vmul.f32 %v568_v24, %v560_v23 }
 0x1ee   : > { %572 = vrot.lane.b32.xlu1 %v570_v25, %s2079_s19 }
 0x1ef   : > { %v563_v26 = vpop.permute.xlu0 %562 }
 0x1f0   : > { %v565_v27 = vmul.f32 %v563_v26, %v560_v23 }
 0x260   : > { %v573_v28 = vpop.permute.xlu1 %572 }
 0x261   : > { %v2384_v29 = vadd.f32 %v573_v28, %v565_v27 }
 0x263   : > { %1864 = vtanh.f32 %v2384_v29 }
 0x26d   : > { %v1865_v36 = vpop.eup %1864 }
 0x26e   : > { %578 = vrot.lane.b32.xlu1 %v1865_v36, %s2079_s19  ;;  %v1577_v36 = vld [vmem:[%s2335_s30 + $0x2] sm:$0x1] }
 0x2e0   : > { %v579_v37 = vpop.permute.xlu1 %578 }
 0x2e1   : > { %v581_v38 = vmul.f32 %v579_v37, %v560_v23 }
 0x2e3   : > { %v582_v39 = vpack.c.bf16 %v581_v38, %v581_v38 }
 0x2e5   : > { %640 = vrot.lane.b32.xlu0 %v582_v39, %s2080_s22 }
 0x357   : > { %v641_v44 = vpop.permute.xlu0 %640 }
 0x358   : > { %1665 = vmatmul.mubr.msk.bf16.vlgmr.msra.gmra.mrb[4].mxu0 %vm457_vm3, %v641_v44  ;;  %1673 = vmatmul.mubr.msk.bf16.vlgmr.msra.gmra.mrb[8].mxu1 %vm457_vm3, %v641_v44 }
 0x359   : > { %1677 = vmatpush3.bf16.msra.mxu0 %v2354_v4  ;;  %1678 = vmatprep.mubr.msk.bf16.mxu0 %vm2078_vm1, %v2077_v3 }
 0x35a   : > { %1683 = vmatpush3.bf16.msra.mxu1 %v2387_v30  ;;  %1686 = vmatprep.mubr.msk.bf16.mxu1 %vm2078_vm1, %v2077_v3 }
 0x35b   : > { %1684 = vmatprep.subr.bf16.mxu1 %v2077_v3  ;;  %1690 = vmatprep.subr.bf16.mxu0 %v2077_v3 }
 0x35e   : > { %1685 = vmatpush3.bf16.msra.mxu1 %v2395_v32 }
 0x35f   : > { %1698 = vmatprep.subr.bf16.mxu1 %v2077_v3 }
 0x360   : > { %1679 = vmatmul.mubr.msk.bf16.vlgmr.msra.gmra.mrb[8].mxu0 %vm507_vm2, %v1572_v45 }
 0x361   : > { %1691 = vmatpush3.bf16.msra.mxu0 %v2392_v31  ;;  %1694 = vmatprep.mubr.msk.bf16.mxu0 %vm2078_vm1, %v2077_v3 }
 0x362   : > { %1692 = vmatprep.subr.bf16.mxu0 %v2077_v3 }
 0x365   : > { %1693 = vmatpush3.bf16.msra.mxu0 %v2402_v34 }
 0x366   : > { %1706 = vmatprep.subr.bf16.mxu0 %v2077_v3 }
 0x42b   : > { %v691_v47 = vpop.f32.mrb[4].mxu0  ;;  %v764_v48 = vpop.f32.mrb[8].mxu1 }
 0x42c   : > { %v692_v49 = vadd.f32 %v691_v47, %v633_v40  ;;  %v1666_v50 = vpop.f32.mrb[5].mxu0  ;;  %v1674_v51 = vpop.f32.mrb[9].mxu1 }
 0x42d   : > { %v694_v52 = vpop.f32.mrb[6].mxu0  ;;  %v767_v53 = vpop.f32.mrb[10].mxu1 }
 0x42e   : > { %v703_v54 = vadd.f32 %v2441_v46, %v692_v49  ;;  %v1667_v55 = vpop.f32.mrb[7].mxu0  ;;  %v1675_v56 = vpop.f32.mrb[11].mxu1 }
 0x430   : > { %1866 = vtanh.f32 %v703_v54 }
 0x433   : > { %v807_v57 = vpop.f32.mrb[8].mxu0 }
 0x434   : > { %v808_v58 = vadd.f32 %v807_v57, %v764_v48  ;;  %v1680_v59 = vpop.f32.mrb[9].mxu0 }
 0x435   : > { %v810_v60 = vpop.f32.mrb[10].mxu0 }
 0x436   : > { %v813_v61 = vadd.f32 %v2378_v12, %v808_v58  ;;  %v1681_v62 = vpop.f32.mrb[11].mxu0 }
 0x438   : > { %1868 = vtanh.f32 %v813_v61 }
 0x43a   : > { %v1867_v63 = vpop.eup %1866 }
 0x43b   : > { %713 = vrot.lane.b32.xlu1 %v1867_v63, %s2079_s19  ;;  %v705_v6 = vmul.f32 0.5, %v1867_v63 }
 0x43d   : > { %v706_v7 = vadd.f32 0.5, %v705_v6 }
 0x43f   : > { %708 = vrot.lane.b32.xlu1 %v442_v0, %s2079_s19 }
 0x442   : > { %v1869_v1 = vpop.eup %1868 }
 0x443   : > { %819 = vrot.lane.b32.xlu0 %v1869_v1, %s2079_s19  ;;  %v815_v10 = vmul.f32 0.5, %v1869_v1 }
 0x445   : > { %v816_v11 = vadd.f32 0.5, %v815_v10 }
 0x447   : > { %v817_v19 = vmul.f32 %v816_v11, %v2384_v29 }
 0x4ad   : > { %v714_v8 = vpop.permute.xlu1 %713 }
 0x4ae   : > { %v716_v9 = vmul.f32 %v714_v8, %v706_v7 }
 0x4b0   : > { %718 = vrot.lane.b32.xlu0 %v716_v9, %s2079_s19 }
 0x4b1   : > { %v709_v15 = vpop.permute.xlu1 %708 }
 0x4b2   : > { %v711_v16 = vmul.f32 %v709_v15, %v706_v7 }
 0x4b5   : > { %v820_v13 = vpop.permute.xlu0 %819 }
 0x4b6   : > { %v822_v14 = vmul.f32 %v820_v13, %v816_v11 }
 0x4b8   : > { %824 = vrot.lane.b32.xlu1 %v822_v14, %s2079_s19 }
 0x522   : > { %v719_v17 = vpop.permute.xlu0 %718 }
 0x523   : > { %v2450_v18 = vadd.f32 %v719_v17, %v711_v16 }
 0x525   : > { %1870 = vtanh.f32 %v2450_v18 }
 0x52a   : > { %v825_v20 = vpop.permute.xlu1 %824 }
 0x52b   : > { %v2454_v21 = vadd.f32 %v825_v20, %v817_v19 }
 0x52d   : > { %1872 = vtanh.f32 %v2454_v21 }
 0x52f   : > { %v1871_v22 = vpop.eup %1870 }
 0x530   : > { %724 = vrot.lane.b32.xlu0 %v1871_v22, %s2079_s19 }
 0x537   : > { %v1873_v23 = vpop.eup %1872 }
 0x538   : > { %830 = vrot.lane.b32.xlu1 %v1873_v23, %s2079_s19 }
 0x5a2   : > { %v725_v24 = vpop.permute.xlu0 %724 }
 0x5a3   : > { %v727_v25 = vmul.f32 %v725_v24, %v706_v7 }
 0x5a5   : > { %v835_v26 = vpack.c.bf16 %v727_v25, %v727_v25 }
 0x5a7   : > { %837 = vrot.lane.b32.xlu0 %v835_v26, %s2080_s22 }
 0x5aa   : > { %v831_v27 = vpop.permute.xlu1 %830 }
 0x5ab   : > { %v833_v28 = vmul.f32 %v831_v27, %v816_v11 }
 0x5ad   : > { %v834_v33 = vpack.c.bf16 %v833_v28, %v833_v28 }
 0x5af   : > { %883 = vrot.lane.b32.xlu1 %v834_v33, %s2080_s22 }
 0x619   : > { %v838_v29 = vpop.permute.xlu0 %837 }
 0x61a   : > { %1687 = vmatmul.mubr.msk.bf16.vlgmr.msra.gmra.mrb[12].mxu1 %vm457_vm3, %v838_v29 }
 0x61b   : > { %1699 = vmatpush3.bf16.msra.mxu1 %v2350_v2  ;;  %1702 = vmatprep.mubr.msk.bf16.mxu1 %vm2078_vm1, %v2077_v3 }
 0x61c   : > { %1700 = vmatprep.subr.bf16.mxu1 %v2077_v3 }
 0x61f   : > { %1701 = vmatpush3.bf16.msra.mxu1 %v2359_v5 }
 0x620   : > { %1712 = vmatprep.subr.bf16.mxu1 %v2077_v3 }
 0x621   : > { %v884_v35 = vpop.permute.xlu1 %883 }
 0x622   : > { %1695 = vmatmul.mubr.msk.bf16.vlgmr.msra.gmra.mrb[12].mxu0 %vm457_vm3, %v884_v35  ;;  %1703 = vmatmul.mubr.msk.bf16.vlgmr.msra.gmra.mrb[16].mxu1 %vm457_vm3, %v884_v35 }
 0x623   : > { %1707 = vmatpush3.bf16.msra.mxu0 %v2354_v4  ;;  %1708 = vmatprep.mubr.msk.bf16.mxu0 %vm2078_vm1, %v2077_v3 }
 0x624   : > { %1713 = vmatpush3.bf16.msra.mxu1 %v2387_v30  ;;  %1716 = vmatprep.mubr.msk.bf16.mxu1 %vm2078_vm1, %v2077_v3 }
 0x625   : > { %1714 = vmatprep.subr.bf16.mxu1 %v2077_v3  ;;  %1720 = vmatprep.subr.bf16.mxu0 %v2077_v3 }
 0x628   : > { %1715 = vmatpush3.bf16.msra.mxu1 %v2395_v32 }
 0x629   : > { %1728 = vmatprep.subr.bf16.mxu1 %v2077_v3 }
 0x62a   : > { %1709 = vmatmul.mubr.msk.bf16.vlgmr.msra.gmra.mrb[16].mxu0 %vm507_vm2, %v1577_v36 }
 0x62b   : > { %1721 = vmatpush3.bf16.msra.mxu0 %v2392_v31  ;;  %1724 = vmatprep.mubr.msk.bf16.mxu0 %vm2078_vm1, %v2077_v3 }
 0x62c   : > { %1722 = vmatprep.subr.bf16.mxu0 %v2077_v3 }
 0x62f   : > { %1723 = vmatpush3.bf16.msra.mxu0 %v2402_v34 }
 0x630   : > { %1736 = vmatprep.subr.bf16.mxu0 %v2077_v3 }
 0x6ed   : > { %v876_v37 = vpop.f32.mrb[12].mxu1 }
 0x6ee   : > { %v1688_v38 = vpop.f32.mrb[13].mxu1 }
 0x6ef   : > { %v879_v39 = vpop.f32.mrb[14].mxu1 }
 0x6f0   : > { %v1689_v40 = vpop.f32.mrb[15].mxu1 }
 0x6f5   : > { %v922_v41 = vpop.f32.mrb[12].mxu0  ;;  %v985_v42 = vpop.f32.mrb[16].mxu1 }
 0x6f6   : > { %v923_v43 = vadd.f32 %v922_v41, %v876_v37  ;;  %v1696_v44 = vpop.f32.mrb[13].mxu0  ;;  %v1704_v45 = vpop.f32.mrb[17].mxu1 }
 0x6f7   : > { %v925_v47 = vpop.f32.mrb[14].mxu0  ;;  %v988_v48 = vpop.f32.mrb[18].mxu1 }
 0x6f8   : > { %v928_v49 = vadd.f32 %v2441_v46, %v923_v43  ;;  %v1697_v50 = vpop.f32.mrb[15].mxu0  ;;  %v1705_v51 = vpop.f32.mrb[19].mxu1 }
 0x6fa   : > { %1874 = vtanh.f32 %v928_v49 }
 0x6fd   : > { %v1028_v52 = vpop.f32.mrb[16].mxu0 }
 0x6fe   : > { %v1029_v53 = vadd.f32 %v1028_v52, %v985_v42  ;;  %v1710_v54 = vpop.f32.mrb[17].mxu0 }
 0x6ff   : > { %v1031_v55 = vpop.f32.mrb[18].mxu0 }
 0x700   : > { %v1034_v56 = vadd.f32 %v2378_v12, %v1029_v53  ;;  %v1711_v57 = vpop.f32.mrb[19].mxu0 }
 0x702   : > { %1876 = vtanh.f32 %v1034_v56 }
 0x704   : > { %v1875_v58 = vpop.eup %1874 }
 0x705   : > { %934 = vrot.lane.b32.xlu0 %v1875_v58, %s2079_s19  ;;  %v930_v60 = vmul.f32 0.5, %v1875_v58 }
 0x707   : > { %v931_v61 = vadd.f32 0.5, %v930_v60 }
 0x709   : > { %v932_v8 = vmul.f32 %v931_v61, %v2450_v18 }
 0x70c   : > { %v1877_v59 = vpop.eup %1876 }
 0x70d   : > { %1040 = vrot.lane.b32.xlu1 %v1877_v59, %s2079_s19  ;;  %v1036_v0 = vmul.f32 0.5, %v1877_v59 }
 0x70f   : > { %v1037_v1 = vadd.f32 0.5, %v1036_v0 }
 0x711   : > { %v1038_v11 = vmul.f32 %v1037_v1, %v2454_v21 }
 0x777   : > { %v935_v62 = vpop.permute.xlu0 %934 }
 0x778   : > { %v937_v63 = vmul.f32 %v935_v62, %v931_v61 }
 0x77a   : > { %939 = vrot.lane.b32.xlu0 %v937_v63, %s2079_s19 }
 0x77f   : > { %v1041_v6 = vpop.permute.xlu1 %1040 }
 0x780   : > { %v1043_v7 = vmul.f32 %v1041_v6, %v1037_v1 }
 0x782   : > { %1045 = vrot.lane.b32.xlu1 %v1043_v7, %s2079_s19 }
 0x7ec   : > { %v940_v9 = vpop.permute.xlu0 %939 }
 0x7ed   : > { %v2495_v10 = vadd.f32 %v940_v9, %v932_v8 }
 0x7ef   : > { %1878 = vtanh.f32 %v2495_v10 }
 0x7f4   : > { %v1046_v13 = vpop.permute.xlu1 %1045 }
 0x7f5   : > { %v2499_v14 = vadd.f32 %v1046_v13, %v1038_v11 }
 0x7f7   : > { %1880 = vtanh.f32 %v2499_v14 }
 0x7f9   : > { %v1879_v15 = vpop.eup %1878 }
 0x7fa   : > { %945 = vrot.lane.b32.xlu0 %v1879_v15, %s2079_s19 }
 0x801   : > { %v1881_v16 = vpop.eup %1880 }
 0x802   : > { %1051 = vrot.lane.b32.xlu1 %v1881_v16, %s2079_s19 }
 0x86c   : > { %v946_v17 = vpop.permute.xlu0 %945 }
 0x86d   : > { %v948_v18 = vmul.f32 %v946_v17, %v931_v61 }
 0x86f   : > { %v1056_v19 = vpack.c.bf16 %v948_v18, %v948_v18 }
 0x871   : > { %1058 = vrot.lane.b32.xlu0 %v1056_v19, %s2080_s22 }
 0x874   : > { %v1052_v20 = vpop.permute.xlu1 %1051 }
 0x875   : > { %v1054_v22 = vmul.f32 %v1052_v20, %v1037_v1 }
 0x877   : > { %v1055_v23 = vpack.c.bf16 %v1054_v22, %v1054_v22 }
 0x879   : > { %1104 = vrot.lane.b32.xlu1 %v1055_v23, %s2080_s22 }
 0x8e3   : > { %v1059_v21 = vpop.permute.xlu0 %1058 }
 0x8e4   : > { %1717 = vmatmul.mubr.msk.bf16.vlgmr.msra.gmra.mrb[20].mxu1 %vm457_vm3, %v1059_v21 }
 0x8e5   : > { %1729 = vmatpush3.bf16.msra.mxu1 %v2350_v2  ;;  %1732 = vmatprep.mubr.msk.bf16.mxu1 %vm2078_vm1, %v2077_v3  ;;  %v1582_v2 = vld [vmem:[%s2335_s30 + $0x3] sm:$0x1]  ;;  %s2607_s30 = sld [smem:[#allocation18_spill]] (!%p1587_p4) }
 0x8e6   : > { %1730 = vmatprep.subr.bf16.mxu1 %v2077_v3 }
 0x8e9   : > { %1731 = vmatpush3.bf16.msra.mxu1 %v2359_v5 }
 0x8ea   : > { %1742 = vmatprep.subr.bf16.mxu1 %v2077_v3 }
 0x8eb   : > { %v1105_v24 = vpop.permute.xlu1 %1104 }
 0x8ec   : > { %1725 = vmatmul.mubr.msk.bf16.vlgmr.msra.gmra.mrb[20].mxu0 %vm457_vm3, %v1105_v24  ;;  %1733 = vmatmul.mubr.msk.bf16.vlgmr.msra.gmra.mrb[24].mxu1 %vm457_vm3, %v1105_v24 }
 0x8ed   : > { %1737 = vmatpush3.bf16.msra.mxu0 %v2354_v4  ;;  %1738 = vmatprep.mubr.msk.bf16.mxu0 %vm2078_vm1, %v2077_v3 }
 0x8ee   : > { %1743 = vmatpush3.bf16.msra.mxu1 %v2387_v30  ;;  %1746 = vmatprep.mubr.msk.bf16.mxu1 %vm2078_vm1, %v2077_v3 }
 0x8ef   : > { %1744 = vmatprep.subr.bf16.mxu1 %v2077_v3  ;;  %1750 = vmatprep.subr.bf16.mxu0 %v2077_v3 }
 0x8f2   : > { %1745 = vmatpush3.bf16.msra.mxu1 %v2395_v32 }
 0x8f4   : > { %1739 = vmatmul.mubr.msk.bf16.vlgmr.msra.gmra.mrb[24].mxu0 %vm507_vm2, %v1582_v2 }
 0x8f5   : > { %1751 = vmatpush3.bf16.msra.mxu0 %v2392_v31  ;;  %1754 = vmatprep.mubr.msk.bf16.mxu0 %vm2078_vm1, %v2077_v3 }
 0x8f6   : > { %1752 = vmatprep.subr.bf16.mxu0 %v2077_v3 }
 0x8f9   : > { %1753 = vmatpush3.bf16.msra.mxu0 %v2402_v34 }
 0x9b7   : > { %v1097_v4 = vpop.f32.mrb[20].mxu1 }
 0x9b8   : > { %v1718_v5 = vpop.f32.mrb[21].mxu1 }
 0x9b9   : > { %v1100_v30 = vpop.f32.mrb[22].mxu1 }
 0x9ba   : > { %v1719_v25 = vpop.f32.mrb[23].mxu1 }
 0x9bf   : > { %v1143_v26 = vpop.f32.mrb[20].mxu0  ;;  %v1206_v27 = vpop.f32.mrb[24].mxu1 }
 0x9c0   : > { %v1144_v28 = vadd.f32 %v1143_v26, %v1097_v4  ;;  %v1726_v33 = vpop.f32.mrb[21].mxu0  ;;  %v1734_v32 = vpop.f32.mrb[25].mxu1 }
 0x9c1   : > { %v1146_v29 = vpop.f32.mrb[22].mxu0  ;;  %v1209_v35 = vpop.f32.mrb[26].mxu1  ;;  %v1588_v33 = vld [vmem:[%s2606_s11] ss:$0 sm:$0xff] (!%p1587_p4) }
 0x9c2   : > { %v1149_v31 = vadd.f32 %v2441_v46, %v1144_v28  ;;  %v1727_v36 = vpop.f32.mrb[23].mxu0  ;;  %v1735_v37 = vpop.f32.mrb[27].mxu1 }
 0x9c3   : > { %v1589_v36 = vld [vmem:[#allocation6] ss:$0 sm:$0xff] (!%p1587_p4) }
 0x9c4   : > { %1882 = vtanh.f32 %v1149_v31 }
 0x9c7   : > { %v1249_v38 = vpop.f32.mrb[24].mxu0 }
 0x9c8   : > { %v1250_v3 = vadd.f32 %v1249_v38, %v1206_v27  ;;  %v1740_v39 = vpop.f32.mrb[25].mxu0 }
 0x9c9   : > { %v1252_v34 = vpop.f32.mrb[26].mxu0 }
 0x9ca   : > { %v1255_v40 = vadd.f32 %v2378_v12, %v1250_v3  ;;  %v1741_v41 = vpop.f32.mrb[27].mxu0 }
 0x9cc   : > { %1884 = vtanh.f32 %v1255_v40 }
 0x9ce   : > { %v1883_v42 = vpop.eup %1882 }
 0x9cf   : > { %1155 = vrot.lane.b32.xlu0 %v1883_v42, %s2079_s19  ;;  %v1151_v44 = vmul.f32 0.5, %v1883_v42 }
 0x9d1   : > { %v1152_v45 = vadd.f32 0.5, %v1151_v44 }
 0x9d3   : > { %v1153_v12 = vmul.f32 %v1152_v45, %v2495_v10 }
 0x9d6   : > { %v1885_v43 = vpop.eup %1884 }
 0x9d7   : > { %1261 = vrot.lane.b32.xlu1 %v1885_v43, %s2079_s19  ;;  %v1257_v49 = vmul.f32 0.5, %v1885_v43 }
 0x9d9   : > { %v1258_v50 = vadd.f32 0.5, %v1257_v49 }
 0x9db   : > { %v1259_v55 = vmul.f32 %v1258_v50, %v2499_v14 }
 0xa41   : > { %v1156_v47 = vpop.permute.xlu0 %1155 }
 0xa42   : > { %v1158_v48 = vmul.f32 %v1156_v47, %v1152_v45 }
 0xa44   : > { %1160 = vrot.lane.b32.xlu0 %v1158_v48, %s2079_s19 }
 0xa49   : > { %v1262_v51 = vpop.permute.xlu1 %1261 }
 0xa4a   : > { %v1264_v52 = vmul.f32 %v1262_v51, %v1258_v50 }
 0xa4c   : > { %1266 = vrot.lane.b32.xlu1 %v1264_v52, %s2079_s19 }
 0xab6   : > { %v1161_v53 = vpop.permute.xlu0 %1160 }
 0xab7   : > { %v1163_v54 = vadd.f32 %v1161_v53, %v1153_v12 }
 0xab9   : > { %1886 = vtanh.f32 %v1163_v54 }
 0xabe   : > { %v1267_v56 = vpop.permute.xlu1 %1266 }
 0xabf   : > { %v1269_v57 = vadd.f32 %v1267_v56, %v1259_v55 }
 0xac1   : > { %1888 = vtanh.f32 %v1269_v57 }
 0xac3   : > { %v1887_v58 = vpop.eup %1886 }
 0xac4   : > { %1166 = vrot.lane.b32.xlu0 %v1887_v58, %s2079_s19 }
 0xacb   : > { %v1889_v59 = vpop.eup %1888 }
 0xacc   : > { %1272 = vrot.lane.b32.xlu1 %v1889_v59, %s2079_s19 }
 0xb36   : > { %v1167_v60 = vpop.permute.xlu0 %1166 }
 0xb37   : > { %v1169_v61 = vmul.f32 %v1167_v60, %v1152_v45 }
 0xb39   : > { %v1277_v62 = vpack.c.bf16 %v1169_v61, %v1169_v61 }
 0xb3b   : > { %1279 = vrot.lane.b32.xlu0 %v1277_v62, %s2080_s22 }
 0xb3e   : > { %v1273_v63 = vpop.permute.xlu1 %1272 }
 0xb3f   : > { %v1275_v0 = vmul.f32 %v1273_v63, %v1258_v50 }
 0xb41   : > { %v1276_v1 = vpack.c.bf16 %v1275_v0, %v1275_v0 }
 0xb43   : > { %1325 = vrot.lane.b32.xlu1 %v1276_v1, %s2080_s22 }
 0xbad   : > { %v1280_v6 = vpop.permute.xlu0 %1279 }
 0xbae   : > { %1747 = vmatmul.mubr.msk.bf16.vlgmr.msra.gmra.mrb[28].mxu1 %vm457_vm3, %v1280_v6 }
 0xbb5   : > { %v1326_v7 = vpop.permute.xlu1 %1325 }
 0xbb6   : > { %1755 = vmatmul.mubr.msk.bf16.vlgmr.msra.gmra.mrb[28].mxu0 %vm457_vm3, %v1326_v7 }
 0xc81   : > { %v1318_v8 = vpop.f32.mrb[28].mxu1 }
 0xc82   : > { %v1748_v9 = vpop.f32.mrb[29].mxu1 }
 0xc83   : > { %v1321_v10 = vpop.f32.mrb[30].mxu1 }
 0xc84   : > { %v1749_v11 = vpop.f32.mrb[31].mxu1 }
 0xc89   : > { %v1364_v13 = vpop.f32.mrb[28].mxu0 }
 0xc8a   : > { %v1365_v14 = vadd.f32 %v1364_v13, %v1318_v8  ;;  %v1756_v15 = vpop.f32.mrb[29].mxu0 }
 0xc8b   : > { %v1367_v16 = vpop.f32.mrb[30].mxu0 }
 0xc8c   : > { %v1370_v17 = vadd.f32 %v2441_v46, %v1365_v14  ;;  %v1757_v18 = vpop.f32.mrb[31].mxu0 }
 0xc8e   : > { %1890 = vtanh.f32 %v1370_v17 }
 0xc98   : > { %v1891_v19 = vpop.eup %1890 }
 0xc99   : > { %1376 = vrot.lane.b32.xlu0 %v1891_v19, %s2079_s19  ;;  %v1372_v20 = vmul.f32 0.5, %v1891_v19 }
 0xc9b   : > { %v1373_v22 = vadd.f32 0.5, %v1372_v20 }
 0xc9d   : > { %v1374_v24 = vmul.f32 %v1373_v22, %v1163_v54 }
 0xd0b   : > { %v1377_v23 = vpop.permute.xlu0 %1376 }
 0xd0c   : > { %v1379_v21 = vmul.f32 %v1377_v23, %v1373_v22 }
 0xd0e   : > { %1381 = vrot.lane.b32.xlu1 %v1379_v21, %s2079_s19 }
 0xd12   : > { %1392 = vrot.lane.b32.xlu1 %v1275_v0, %s2080_s22 }
 0xd80   : > { %v1382_v2 = vpop.permute.xlu1 %1381 }
 0xd81   : > { %v1384_v4 = vadd.f32 %v1382_v2, %v1374_v24 }
 0xd83   : > { %1892 = vtanh.f32 %v1384_v4 }
 0xd84   : > { %v1393_v5 = vpop.permute.xlu1 %1392 }
 0xd85   : > { %1396 = vst.msk [vmem:[#allocation2] sm:$0x3] %vm1395_vm4, %v1393_v5 }
 0xd8d   : > { %v1893_v46 = vpop.eup %1892 }
 0xd8e   : > { %1387 = vrot.lane.b32.xlu0 %v1893_v46, %s2079_s19 }
 0xd92   : > { %1398 = vrot.lane.b32.xlu0 %v1269_v57, %s2081_s27 }
 0xd96   : > { %1408 = vrot.lane.b32.xlu0 %v1384_v4, %s2081_s27 }
 0xd9a   : > { %1422 = vrot.lane.b32.xlu0 (!%p1587_p4), %v1588_v33, %s2082_s28 }
 0xe00   : > { %v1388_v30 = vpop.permute.xlu0 %1387 }
 0xe01   : > { %v1390_v25 = vmul.f32 %v1388_v30, %v1373_v22 }
 0xe03   : > { %1403 = vrot.lane.b32.xlu1 %v1390_v25, %s2080_s22 }
 0xe04   : > { %v1399_v26 = vpop.permute.xlu0 %1398 }
 0xe05   : > { %1401 = vst.msk [vmem:[#allocation3] sm:$0x3] %vm1395_vm4, %v1399_v26 }
 0xe08   : > { %v1409_v27 = vpop.permute.xlu0 %1408 }
 0xe09   : > { %1411 = vst.msk [vmem:[#allocation5] sm:$0x3] %vm1395_vm4, %v1409_v27 }
 0xe0c   : > { %v1423_v32 = vpop.permute.xlu0 (!%p1587_p4), %1422 }
 0xe0d   : > { %v1425_v29 = vmul.f32 (!%p1587_p4), %v1423_v32, %v1390_v25 }
 0xe0f   : > { %1427 = vrot.lane.b32.xlu0 (!%p1587_p4), %v1425_v29, %s2082_s28 }
 0xe70   : > { %1415 = sbr.rel (%p1587_p4) target bundleno = 3860 (0xf14), region = 80 }
 0xe75   : > { %v1404_v28 = vpop.permute.xlu1 %1403 }
 0xe76   : > { %1406 = vst.msk [vmem:[#allocation4] sm:$0x3] %vm1395_vm4, %v1404_v28 }
 0xe81   : > { %v1428_v35 = vpop.permute.xlu0 %1427 }
 0xe82   : > { %v1430_v31 = vsel %vm1395_vm4, %v1428_v35, 0.0 }
 0xe83   : > { %1431 = vadd.xlane.f32.xlu1 %v1430_v31 }
 0xf10   : > { %v1432_v37 = vpop.xlane.xlu1 %1431 }
 0xf11   : > { %v1440_v38 = vadd.f32 %v1589_v36, %v1432_v37 }
 0xf13   : > { %1442 = vst.msk [vmem:[%s2607_s30] sm:$0x3] %vm1441_vm5, %v1440_v38 }
 0xf14 PF: > { %s26_s16 = sadd.s32 1, %s2066_s16   ;;  %s2608_s11 = smov %s2050_s12 }
 0xf15   : > { %p23_p5 = scmp.ge.s32.totalorder %s26_s16, 4   ;;  %s2609_s12 = smov %s2054_s13 }
 0xf16   : > { %s2610_s13 = smov %s2289_s26  ;;  %s2611_s14 = smov %s2062_s15 }
 0xf17   : > { %s2612_s15 = smov %s2614_s9  ;;  %25 = sbr.rel (!%p23_p5) target bundleno = 9 (0x9), region = 119 }
 0xf1e   :  { %1462 = vsyncpa [#allocation8], 1 }
 0xf1f   :  { %1464 = vsyncpa [#allocation8 + $0x1], 1 }
 0xf20   :  { %1465 = vsyncpa [#allocation10], 1 }
 0xf21   :  { %1466 = vsyncpa [#allocation13], 1 }

</bundles_post_ra>
